<compile_context>
chip_gen: v7x
topology: tpu7x:2x2x1
jax: 0.10.0
libtpu: 0.0.40
codegen_flags: <defaults>
</compile_context>

<pallas_src>
import functools
import math

import jax
import jax.numpy as jnp
from jax.experimental import pallas as pl
from jax.experimental.pallas import tpu as pltpu

_LANE = 128                     # vreg lane width
_SUBLANE = 8                    # f32 sublane count
_SMALL_BYPASS_BYTES = 1 << 20   # below this, a fused XLA subtract beats a custom call


def _cdiv(a, b):
    return -(-a // b)


def _round_up(x, m):
    return _cdiv(x, m) * m


@functools.lru_cache(maxsize=None)
def _tpu_config():
    """Generation-aware block budget / VMEM limit / TensorCore-count hint."""
    vmem = None
    try:
        vmem = getattr(pltpu.get_tpu_info(), "vmem_capacity_bytes", None)
    except Exception:
        vmem = None
    if vmem is not None and vmem >= (100 << 20):
        # v5e / v6e: 128 MiB VMEM, 1 TensorCore per chip.
        # Worst case live: 3 operands x 2 pipeline buffers x 8 MiB = 48 MiB.
        return {"block_bytes": 8 << 20, "vmem_limit": 64 << 20, "two_cores": False}
    # v7x (64 MiB VMEM per TC, 2 TCs) or unknown chip: stay conservative.
    # Worst case live: 3 x 2 x 4 MiB = 24 MiB < 32 MiB scoped limit.
    return {"block_bytes": 4 << 20, "vmem_limit": 32 << 20, "two_cores": True}


def _sub_kernel(x_ref, y_ref, o_ref):
    # HBM-bound elementwise subtract.  y_ref either matches x_ref's tile or has
    # size-1 broadcast axes that expand in-kernel (no HBM broadcast).
    o_ref[...] = x_ref[...] - y_ref[...]


def _pick_row_tile(rows, lane, block_bytes, two_cores):
    """Row tile: a multiple of 8 sublanes (or == rows), sized by a byte budget."""
    bytes_per_row = lane * 4
    rt = max((block_bytes // bytes_per_row) // _SUBLANE * _SUBLANE, _SUBLANE)
    if rt >= rows:
        # Whole slab fits one block.  Split in two only on 2-TensorCore parts,
        # and only when each half is still a healthy (>= ~2 MiB) DMA.
        if two_cores and rows >= 2 * _SUBLANE and rows * bytes_per_row >= (4 << 20):
            half = _round_up((rows + 1) // 2, _SUBLANE)
            if half < rows:
                return half
        return rows
    steps = _cdiv(rows, rt)
    if two_cores and steps > 1 and steps % 2 == 1:
        # Prefer an even number of grid steps so both TensorCores stay balanced.
        for target in (steps + 1, steps + 3):
            cand = _round_up(_cdiv(rows, target), _SUBLANE)
            if cand >= _SUBLANE and _cdiv(rows, cand) % 2 == 0:
                return cand
    return rt


def _call_sub_2d(x2d, y2d, y_is_row, cfg):
    """x2d - y2d on a (rows, lane) slab; y2d is (rows, lane) or a (1, lane) row."""
    m, lane = x2d.shape
    rt = _pick_row_tile(m, lane, cfg["block_bytes"], cfg["two_cores"])
    grid = (pl.cdiv(m, rt),)
    if y_is_row:
        # Row-constant subtrahend: tiny resident (1, lane) block, broadcast
        # across sublanes inside the kernel -> never materialized in HBM.
        y_spec = pl.BlockSpec((1, lane), lambda i: (0, 0))
    else:
        y_spec = pl.BlockSpec((rt, lane), lambda i: (i, 0))
    # TODO(synk): when the caller can donate x, input_output_aliases={0: 0}
    # (+ donate_argnums on a jit wrapper) would drop the separate output
    # allocation; not done here because torch.sub must not invalidate inputs.
    return pl.pallas_call(
        _sub_kernel,
        out_shape=jax.ShapeDtypeStruct((m, lane), jnp.float32),
        grid_spec=pltpu.PrefetchScalarGridSpec(
            num_scalar_prefetch=0,
            grid=grid,
            in_specs=[pl.BlockSpec((rt, lane), lambda i: (i, 0)), y_spec],
            out_specs=pl.BlockSpec((rt, lane), lambda i: (i, 0)),
        ),
        compiler_params=pltpu.CompilerParams(
            dimension_semantics=("parallel",),
            vmem_limit_bytes=cfg["vmem_limit"],
        ),
    )(x2d, y2d)


def _call_sub_grouped(x_nd, b_nd, b_group_dims, cfg):
    """x_nd: (g0..g_{m-1}, inner, lane); b_nd: (bg0..bg_{m-1}, 1, lane).

    The subtrahend stays compact in HBM; the grid/index_map select its group
    block and the in-kernel subtract broadcasts it over the `inner` rows.
    """
    *group_dims, inner, lane = x_nd.shape
    m = len(group_dims)
    g_last = group_dims[-1]
    inner_bytes = inner * lane * 4
    if inner_bytes >= cfg["block_bytes"]:
        gt = 1
        rt = _pick_row_tile(inner, lane, cfg["block_bytes"], cfg["two_cores"])
    else:
        gt = max(1, min(g_last, cfg["block_bytes"] // inner_bytes))
        rt = inner  # full inner dim per block -> always a legal block shape
    grid = tuple(group_dims[:-1]) + (pl.cdiv(g_last, gt), pl.cdiv(inner, rt))
    x_block = (1,) * (m - 1) + (gt, rt, lane)
    b_block = (1,) * (m - 1) + (gt, 1, lane)
    bgd = tuple(b_group_dims)

    def x_map(*idx):
        return tuple(idx[:-2]) + (idx[-2], idx[-1], 0)

    def b_map(*idx):
        outer = tuple(idx[i] if bgd[i] > 1 else 0 for i in range(m - 1))
        return outer + (idx[-2], 0, 0)

    return pl.pallas_call(
        _sub_kernel,
        out_shape=jax.ShapeDtypeStruct(x_nd.shape, jnp.float32),
        grid_spec=pltpu.PrefetchScalarGridSpec(
            num_scalar_prefetch=0,
            grid=grid,
            in_specs=[pl.BlockSpec(x_block, x_map), pl.BlockSpec(b_block, b_map)],
            out_specs=pl.BlockSpec(x_block, x_map),
        ),
        compiler_params=pltpu.CompilerParams(
            dimension_semantics=("parallel",) * len(grid),
            vmem_limit_bytes=cfg["vmem_limit"],
        ),
    )(x_nd, b_nd)


def _fallback_1d(a, b, out_shape, total, cfg):
    """No 128-multiple trailing fold: flat 1-D run with a cdiv grid; Pallas
    masks the ragged final block (no jnp.pad / trailing-slice passes)."""
    a_full_shaped = ((1,) * (len(out_shape) - a.ndim) + a.shape) == out_shape
    a_flat = (a.reshape(-1) if a_full_shaped
              else jnp.broadcast_to(a, out_shape).reshape(-1))
    chunk = _SUBLANE * _LANE  # 1024-element granule keeps blocks (8,128)-clean
    if total * 4 <= cfg["block_bytes"]:
        tile = total  # single full-dim block is always a legal block shape
    else:
        tile = max((cfg["block_bytes"] // 4) // chunk * chunk, chunk)
    grid = (pl.cdiv(total, tile),)
    if b.size == 1:
        y = b.reshape(1)
        y_spec = pl.BlockSpec((1,), lambda i: (0,))
    else:
        y = jnp.broadcast_to(b, out_shape).reshape(-1)
        y_spec = pl.BlockSpec((tile,), lambda i: (i,))
    out = pl.pallas_call(
        _sub_kernel,
        out_shape=jax.ShapeDtypeStruct((total,), jnp.float32),
        grid_spec=pltpu.PrefetchScalarGridSpec(
            num_scalar_prefetch=0,
            grid=grid,
            in_specs=[pl.BlockSpec((tile,), lambda i: (i,)), y_spec],
            out_specs=pl.BlockSpec((tile,), lambda i: (i,)),
        ),
        compiler_params=pltpu.CompilerParams(
            dimension_semantics=("parallel",),
            vmem_limit_bytes=cfg["vmem_limit"],
        ),
    )(a_flat, y)
    return out.reshape(out_shape)


@jax.jit
def _sub_impl(a, b):
    """General broadcasting subtract a - b, Pallas-backed for non-tiny slabs."""
    a = jnp.asarray(a, jnp.float32)
    b = jnp.asarray(b, jnp.float32)
    out_shape = jnp.broadcast_shapes(a.shape, b.shape)
    total = math.prod(out_shape)
    if total == 0:
        return jnp.zeros(out_shape, jnp.float32)
    # Small-size bypass: custom-call dispatch + pipeline prologue dominate tiny
    # slabs, and a plain XLA op fuses with surrounding producers/consumers.
    if total * 4 <= _SMALL_BYPASS_BYTES:
        return a - b

    cfg = _tpu_config()
    ndim = len(out_shape)

    # Smallest trailing fold whose product is a multiple of 128 and whose
    # minimal (8, lane) block still fits the per-generation byte budget.
    fold, acc = None, 1
    for k in range(1, ndim + 1):
        acc *= out_shape[-k]
        if acc % _LANE == 0:
            if acc * 4 * _SUBLANE <= cfg["block_bytes"]:
                fold = k
            break
    if fold is None:
        return _fallback_1d(a, b, out_shape, total, cfg)

    lane = acc
    rows = total // lane
    row_dims = out_shape[: ndim - fold]
    tail_dims = out_shape[ndim - fold:]

    a_aligned = (1,) * (ndim - a.ndim) + a.shape
    b_aligned = (1,) * (ndim - b.ndim) + b.shape

    if a_aligned == out_shape:
        a_full = a.reshape(out_shape)  # pure reshape, no HBM copy
    else:
        # TODO(synk): rare minuend-broadcast case still materializes in HBM; a
        # symmetric compact-operand path (or allow_input_fusion) would fix it.
        a_full = jnp.broadcast_to(a, out_shape)

    b_row = b_aligned[: ndim - fold]
    varying = [i for i, d in enumerate(b_row) if d != 1]

    if not varying:
        # Subtrahend constant across the row axis (the classic `x - val` case):
        # one (1, lane) block, broadcast in-kernel -> never HBM-materialized.
        y2d = jnp.broadcast_to(b.reshape(b_aligned[ndim - fold:]), tail_dims)
        y2d = y2d.reshape(1, lane)
        out2d = _call_sub_2d(a_full.reshape(rows, lane), y2d, True, cfg)
        return out2d.reshape(out_shape)

    last_var = varying[-1]
    group_dims = row_dims[: last_var + 1]
    b_group_dims = b_row[: last_var + 1]
    inner = math.prod(row_dims[last_var + 1:])
    b_compact_elems = math.prod(b_group_dims) * lane
    if 2 * b_compact_elems <= total:
        # Row-varying but broadcastable subtrahend (e.g. per-channel val):
        # keep it compact in HBM; the grid/index_map replicate its group block.
        b_rowpart = jnp.broadcast_to(b.reshape(b_aligned),
                                     b_aligned[: ndim - fold] + tail_dims)
        b_nd = b_rowpart.reshape(tuple(b_group_dims) + (1, lane))
        x_nd = a_full.reshape(tuple(group_dims) + (inner, lane))
        out_nd = _call_sub_grouped(x_nd, b_nd, b_group_dims, cfg)
        return out_nd.reshape(out_shape)

    # Subtrahend is (nearly) output-sized anyway: tile it exactly like the
    # minuend (when shapes already match, broadcast_to/reshape are no-ops).
    y2d = jnp.broadcast_to(b, out_shape).reshape(rows, lane)
    out2d = _call_sub_2d(a_full.reshape(rows, lane), y2d, False, cfg)
    return out2d.reshape(out_shape)


class SubPallas:
    """Pallas-backed mirror of hummingbird's `Sub` operator.

    forward(x)      -> x - self.val   (val is the frozen float32 parameter)
    forward(x0, x1) -> x0 - x1
    """

    def __init__(self, val=None):
        self.val = None if val is None else jnp.asarray(val, dtype=jnp.float32)

    def forward(self, *x):
        if len(x) == 1:
            if self.val is None:
                raise ValueError("Sub with a single input requires a stored `val`.")
            return _sub_impl(x[0], self.val)
        if len(x) != 2:
            raise ValueError(f"Sub expects 1 or 2 inputs, got {len(x)}.")
        return _sub_impl(x[0], x[1])

    __call__ = forward


if __name__ == "__main__":
    key = jax.random.PRNGKey(0)
    k0, k1, k2, k3, k4, k5 = jax.random.split(key, 6)

    # --- Pallas path 1: tabular `x - val`, val constant across rows
    # (row-constant subtrahend -> single resident (1, lane) block).
    N, F = 2048, 256  # 2 MiB slab -> above the jnp small-size bypass
    x = jax.random.normal(k0, (N, F), dtype=jnp.float32)
    val = jax.random.normal(k1, (F,), dtype=jnp.float32)
    out1 = jax.block_until_ready(SubPallas(val=val)(x))
    assert out1.shape == (N, F)
    assert jnp.allclose(out1, x - val, atol=1e-6), "single-input (val) path mismatch"

    # --- Pallas path 2: two full-shape inputs (fully tiled subtrahend).
    y = jax.random.normal(k2, (N, F), dtype=jnp.float32)
    out2 = jax.block_until_ready(SubPallas(val=None)(x, y))
    assert jnp.allclose(out2, x - y, atol=1e-6), "two-input path mismatch"

    # --- Pallas path 3: per-channel val on an NCHW slab (row-varying but
    # broadcastable subtrahend -> compact-b grouped kernel, no HBM broadcast).
    B, C, H, W = 2, 8, 128, 256
    xc = jax.random.normal(k3, (B, C, H, W), dtype=jnp.float32)
    val_c = jax.random.normal(k4, (C, 1, 1), dtype=jnp.float32)
    out3 = jax.block_until_ready(SubPallas(val=val_c)(xc))
    assert out3.shape == (B, C, H, W)
    assert jnp.allclose(out3, xc - val_c, atol=1e-6), "per-channel val path mismatch"

    # --- Small / awkward shapes from the module spec: handled by the jnp
    # bypass (custom-call dispatch would dominate at these sizes).
    xs = jax.random.normal(k5, (2, 4, 16, 16), dtype=jnp.float32)
    out4 = jax.block_until_ready(SubPallas(val=jnp.float32(1.5))(xs))
    assert jnp.allclose(out4, xs - 1.5, atol=1e-6), "small-shape bypass mismatch"

    zs = jax.random.normal(k0, (3, 5, 7), dtype=jnp.float32)
    out5 = jax.block_until_ready(SubPallas(val=[0.25])(zs))
    assert out5.shape == (3, 5, 7)
    assert jnp.allclose(out5, zs - 0.25, atol=1e-6), "awkward-shape bypass mismatch"

    print("KERNEL_OK")
</pallas_src>

<mosaic_0001>
module attributes {stable_mosaic.version = 11 : i64} {
  func.func @_sub_kernel(%arg0: i32, %arg1: memref<2048x256xf32, #tpu.memory_space<vmem>>, %arg2: memref<1x256xf32, #tpu.memory_space<vmem>>, %arg3: memref<2048x256xf32, #tpu.memory_space<vmem>>) attributes {dimension_semantics = [#tpu.dimension_semantics<parallel>], iteration_bounds = array<i64: 1>, scalar_prefetch = 0 : i64, scratch_operands = 0 : i64, tpu.core_type = #tpu.core_type<tc>, window_params = [{transform_indices = @transform_0, window_bounds = array<i64: 2048, 256>}, {pipeline_mode = #tpu.pipeline_mode<synchronous>, transform_indices = @transform_1, window_bounds = array<i64: 1, 256>}, {transform_indices = @transform_2, window_bounds = array<i64: 2048, 256>}]} {
    %c0 = arith.constant 0 : index
    %c0_0 = arith.constant 0 : index
    %0 = vector.load %arg1[%c0, %c0_0] : memref<2048x256xf32, #tpu.memory_space<vmem>>, vector<2048x256xf32>
    %c0_1 = arith.constant 0 : index
    %c0_2 = arith.constant 0 : index
    %1 = vector.load %arg2[%c0_1, %c0_2] : memref<1x256xf32, #tpu.memory_space<vmem>>, vector<1x256xf32>
    %2 = vector.broadcast %1 : vector<1x256xf32> to vector<2048x256xf32>
    %3 = arith.subf %0, %2 : vector<2048x256xf32>
    %c0_3 = arith.constant 0 : index
    %c0_4 = arith.constant 0 : index
    %4 = vector.load %arg3[%c0_3, %c0_4] : memref<2048x256xf32, #tpu.memory_space<vmem>>, vector<2048x256xf32>
    tpu.vector_store %arg3[%c0_3, %c0_4], %3 {strides = array<i32>} : memref<2048x256xf32, #tpu.memory_space<vmem>>, vector<2048x256xf32>,
    return
  }
  func.func @transform_0(%arg0: i32) -> (i32, i32) {
    %c0_i32 = arith.constant 0 : i32
    %c0_i32_0 = arith.constant 0 : i32
    return %arg0, %c0_i32 : i32, i32
  }
  func.func @transform_1(%arg0: i32) -> (i32, i32) {
    %c0_i32 = arith.constant 0 : i32
    %c0_i32_0 = arith.constant 0 : i32
    %c0_i32_1 = arith.constant 0 : i32
    return %c0_i32, %c0_i32_0 : i32, i32
  }
  func.func @transform_2(%arg0: i32) -> (i32, i32) {
    %c0_i32 = arith.constant 0 : i32
    %c0_i32_0 = arith.constant 0 : i32
    return %arg0, %c0_i32 : i32, i32
  }
}

</mosaic_0001>

<bundles_post_ra>
// kernel: _sub_impl.1
= control target key start
LH: loop header
LB: loop body
LE: loop exit
PB: predicated region body
PF: predicated region fallthrough
CT: control target
= control target key end

     0   :  { %7 = vsyncpa [#allocation3], 0  ;;  %s2259_s0 = inlined_call_operand.hbm [shape: f32[2048,256], index: 0, kind: input, shape index: {}]   ;;  %s2260_s1 = inlined_call_operand.hbm [shape: f32[1,256], index: 1, kind: input, shape index: {}]   ;;  %s2261_s2 = inlined_call_operand.hbm [shape: f32[2048,256], index: 2, kind: output, shape index: {}]  }
   0x1   :  { %8 = vsyncpa [#allocation6], 0 }
   0x2   :  { %9 = vsyncpa [#allocation4], 0  ;;  %s1681_s9 = smov [#allocation2]   ;;  %s1609_s13 = scalar_lea.hbm %s2259_s0, 65536 }
   0x3   :  { %s15_s10 = sshll.u32 %s1681_s9, 4  ;;  %p1610_p0 = scmp.ne.s32.totalorder %s2259_s0, %s1609_s13  ;;  %s16_s10 = int_to_ptr.vmem [resolvable:$true] %s15_s10 }
   0x4   :  { %p1613_p1 = scmp.lt.u32.totalorder %s1609_s13, %s2259_s0 }
   0x6   :  { %p1615_p2 = pnand %p1613_p1, %p1610_p0 }
   0x8   :  { %1618 = shalt.err (!%p1615_p2)
}
   0x9   :  { %s1619_s18 = scalar_lea.vmem %s16_s10, 65536  ;;  %p1624_p4 = scmp.lt.s32.totalorder %s16_s10, %s16_s10 }
   0xa   :  { %p1620_p3 = scmp.ne.s32.totalorder %s16_s10, %s1619_s18  ;;  %p1625_p5 = scmp.lt.s32.totalorder %s1619_s18, %s1619_s18 }
   0xc   :  { %p1626_p6 = por %p1625_p5, %p1624_p4 }
   0xe   :  { %p1627_p7 = pnand %p1626_p6, %p1620_p3 }
  0x10   :  { %1630 = shalt.err (!%p1627_p7)
}
  0x11   :  { %s1682_s19 = smov 256   ;;  %s1683_s20 = smov 16  }
  0x12   :  { %21 = dma.hbm_to_vmem [thread:$0]  %s2259_s0, 65536, %s16_s10, [#allocation3], %s1682_s19, %s1682_s19, %s1683_s20  }
  0x13   :  { %s1684_s23 = smov [#allocation5]   ;;  %s1631_s27 = scalar_lea.hbm %s2260_s1, 32 }
  0x14   :  { %s28_s24 = sshll.u32 %s1684_s23, 4  ;;  %p1632_p8 = scmp.ne.s32.totalorder %s2260_s1, %s1631_s27  ;;  %s29_s24 = int_to_ptr.vmem [resolvable:$true] %s28_s24 }
  0x15   :  { %p1635_p9 = scmp.lt.u32.totalorder %s1631_s27, %s2260_s1 }
  0x17   :  { %p1637_p10 = pnand %p1635_p9, %p1632_p8 }
  0x19   :  { %1640 = shalt.err (!%p1637_p10)
}
  0x1a   :  { %s1641_s4 = scalar_lea.vmem %s29_s24, 32  ;;  %p1646_p12 = scmp.lt.s32.totalorder %s29_s24, %s29_s24 }
  0x1b   :  { %p1642_p11 = scmp.ne.s32.totalorder %s29_s24, %s1641_s4  ;;  %p1647_p13 = scmp.lt.s32.totalorder %s1641_s4, %s1641_s4 }
  0x1d   :  { %p1648_p0 = por %p1647_p13, %p1646_p12 }
  0x1f   :  { %p1649_p1 = pnand %p1648_p0, %p1642_p11 }
  0x21   :  { %1652 = shalt.err (!%p1649_p1)
}
  0x22   :  { %31 = dma.hbm_to_vmem [thread:$0]  %s2260_s1, 32, %s29_s24, [#allocation6]  }
  0x23   :  { %1675 = dma.done.wait [#allocation3], 65536  }
  0x24   :  { %1676 = vsyncadd [#allocation3], 4294901760 }
  0x25   :  { %1677 = dma.done.wait [#allocation6], 32  }
  0x26   :  { %1678 = vsyncadd [#allocation6], 4294967264  ;;  %v552_v0 = vlaneseq  ;;  %v38_v4 = vld [vmem:[#allocation2] sm:$0xff]  ;;  %v39_v6 = vld [vmem:[#allocation2 + $0x8] sm:$0xff]  ;;  %s1685_s1 = smov [#allocation7]  }
  0x27   :  { %v550_v5 = vld [vmem:[#allocation5] sm:$0x3]  ;;  %v40_v9 = vld [vmem:[#allocation2 + $0x10] sm:$0xff]  ;;  %v41_v10 = vld [vmem:[#allocation2 + $0x18] sm:$0xff]  ;;  %s1591_s6 = sshll.u32 %s1685_s1, 4  ;;  %s1592_s6 = int_to_ptr.vmem [resolvable:$true] %s1591_s6 }
  0x28   :  { %v553_v1 = vshrl.u32 %v552_v0, 7  ;;  %v42_v11 = vld [vmem:[#allocation2 + $0x20] sm:$0xff]  ;;  %v43_v12 = vld [vmem:[#allocation2 + $0x28] sm:$0xff]  ;;  %v44_v13 = vld [vmem:[#allocation2 + $0x30] sm:$0xff]  ;;  %s1653_s7 = scalar_lea.vmem %s1592_s6, 65536  ;;  %p1658_p3 = scmp.lt.s32.totalorder %s1592_s6, %s1592_s6 }
  0x29   :  { %v45_v14 = vld [vmem:[#allocation2 + $0x38] sm:$0xff]  ;;  %v46_v19 = vld [vmem:[#allocation2 + $0x40] sm:$0xff]  ;;  %v47_v20 = vld [vmem:[#allocation2 + $0x48] sm:$0xff]  ;;  %p1654_p2 = scmp.ne.s32.totalorder %s1592_s6, %s1653_s7  ;;  %p1659_p4 = scmp.lt.s32.totalorder %s1653_s7, %s1653_s7 }
  0x2a   :  { %v554_v2 = vsub.s32 0, %v553_v1  ;;  %v558_v3 = vsub.s32 1, %v553_v1  ;;  %v48_v21 = vld [vmem:[#allocation2 + $0x50] sm:$0xff]  ;;  %v49_v26 = vld [vmem:[#allocation2 + $0x58] sm:$0xff]  ;;  %v50_v27 = vld [vmem:[#allocation2 + $0x60] sm:$0xff] }
  0x2b   :  { %v51_v28 = vld [vmem:[#allocation2 + $0x68] sm:$0xff]  ;;  %v52_v33 = vld [vmem:[#allocation2 + $0x70] sm:$0xff]  ;;  %v53_v34 = vld [vmem:[#allocation2 + $0x78] sm:$0xff]  ;;  %p1660_p5 = por %p1659_p4, %p1658_p3 }
  0x2c   :  { %v1728_v7 = vrot.slane %v550_v5, %v554_v2  ;;  %v1730_v8 = vrot.slane %v550_v5, %v558_v3  ;;  %v54_v35 = vld [vmem:[#allocation2 + $0x80] sm:$0xff]  ;;  %v55_v40 = vld [vmem:[#allocation2 + $0x88] sm:$0xff]  ;;  %v56_v41 = vld [vmem:[#allocation2 + $0x90] sm:$0xff] }
  0x2d   :  { %v57_v42 = vld [vmem:[#allocation2 + $0x98] sm:$0xff]  ;;  %v58_v47 = vld [vmem:[#allocation2 + $0xa0] sm:$0xff]  ;;  %v59_v48 = vld [vmem:[#allocation2 + $0xa8] sm:$0xff]  ;;  %p1661_p6 = pnand %p1660_p5, %p1654_p2 }
  0x2e   :  { %v562_v15 = vsub.f32 %v38_v4, %v1728_v7  ;;  %v563_v16 = vsub.f32 %v39_v6, %v1730_v8  ;;  %v564_v17 = vsub.f32 %v40_v9, %v1728_v7  ;;  %v565_v18 = vsub.f32 %v41_v10, %v1730_v8  ;;  %v60_v49 = vld [vmem:[#allocation2 + $0xb0] sm:$0xff]  ;;  %v61_v53 = vld [vmem:[#allocation2 + $0xb8] sm:$0xff]  ;;  %v62_v54 = vld [vmem:[#allocation2 + $0xc0] sm:$0xff] }
  0x2f   :  { %v566_v22 = vsub.f32 %v42_v11, %v1728_v7  ;;  %v567_v23 = vsub.f32 %v43_v12, %v1730_v8  ;;  %v568_v24 = vsub.f32 %v44_v13, %v1728_v7  ;;  %v569_v25 = vsub.f32 %v45_v14, %v1730_v8  ;;  %v63_v55 = vld [vmem:[#allocation2 + $0xc8] sm:$0xff]  ;;  %v64_v59 = vld [vmem:[#allocation2 + $0xd0] sm:$0xff]  ;;  %v65_v60 = vld [vmem:[#allocation2 + $0xd8] sm:$0xff] }
  0x30   :  { %1074 = vst [vmem:[#allocation7] sm:$0xff] %v562_v15  ;;  %1075 = vst [vmem:[#allocation7 + $0x8] sm:$0xff] %v563_v16  ;;  %v570_v29 = vsub.f32 %v46_v19, %v1728_v7  ;;  %v571_v30 = vsub.f32 %v47_v20, %v1730_v8  ;;  %v572_v31 = vsub.f32 %v48_v21, %v1728_v7  ;;  %v66_v61 = vld [vmem:[#allocation2 + $0xe0] sm:$0xff]  ;;  %v67_v1 = vld [vmem:[#allocation2 + $0xe8] sm:$0xff] }
  0x31   :  { %1076 = vst [vmem:[#allocation7 + $0x10] sm:$0xff] %v564_v17  ;;  %1077 = vst [vmem:[#allocation7 + $0x18] sm:$0xff] %v565_v18  ;;  %v573_v32 = vsub.f32 %v49_v26, %v1730_v8  ;;  %v574_v36 = vsub.f32 %v50_v27, %v1728_v7  ;;  %v575_v37 = vsub.f32 %v51_v28, %v1730_v8  ;;  %v68_v2 = vld [vmem:[#allocation2 + $0xf0] sm:$0xff]  ;;  %v69_v3 = vld [vmem:[#allocation2 + $0xf8] sm:$0xff] }
  0x32   :  { %1078 = vst [vmem:[#allocation7 + $0x20] sm:$0xff] %v566_v22  ;;  %1079 = vst [vmem:[#allocation7 + $0x28] sm:$0xff] %v567_v23  ;;  %v576_v38 = vsub.f32 %v52_v33, %v1728_v7  ;;  %v577_v39 = vsub.f32 %v53_v34, %v1730_v8  ;;  %v578_v43 = vsub.f32 %v54_v35, %v1728_v7  ;;  %v70_v9 = vld [vmem:[#allocation2 + $0x100] sm:$0xff]  ;;  %v71_v10 = vld [vmem:[#allocation2 + $0x108] sm:$0xff] }
  0x33   :  { %1080 = vst [vmem:[#allocation7 + $0x30] sm:$0xff] %v568_v24  ;;  %1081 = vst [vmem:[#allocation7 + $0x38] sm:$0xff] %v569_v25  ;;  %v579_v44 = vsub.f32 %v55_v40, %v1730_v8  ;;  %v580_v45 = vsub.f32 %v56_v41, %v1728_v7  ;;  %v581_v46 = vsub.f32 %v57_v42, %v1730_v8  ;;  %v72_v11 = vld [vmem:[#allocation2 + $0x110] sm:$0xff]  ;;  %v73_v15 = vld [vmem:[#allocation2 + $0x118] sm:$0xff] }
  0x34   :  { %1082 = vst [vmem:[#allocation7 + $0x40] sm:$0xff] %v570_v29  ;;  %1083 = vst [vmem:[#allocation7 + $0x48] sm:$0xff] %v571_v30  ;;  %v582_v50 = vsub.f32 %v58_v47, %v1728_v7  ;;  %v583_v51 = vsub.f32 %v59_v48, %v1730_v8  ;;  %v584_v52 = vsub.f32 %v60_v49, %v1728_v7  ;;  %v74_v16 = vld [vmem:[#allocation2 + $0x120] sm:$0xff]  ;;  %v75_v17 = vld [vmem:[#allocation2 + $0x128] sm:$0xff] }
  0x35   :  { %1084 = vst [vmem:[#allocation7 + $0x50] sm:$0xff] %v572_v31  ;;  %1085 = vst [vmem:[#allocation7 + $0x58] sm:$0xff] %v573_v32  ;;  %v585_v56 = vsub.f32 %v61_v53, %v1730_v8  ;;  %v586_v57 = vsub.f32 %v62_v54, %v1728_v7  ;;  %v587_v58 = vsub.f32 %v63_v55, %v1730_v8  ;;  %v76_v21 = vld [vmem:[#allocation2 + $0x130] sm:$0xff]  ;;  %v77_v22 = vld [vmem:[#allocation2 + $0x138] sm:$0xff] }
  0x36   :  { %1086 = vst [vmem:[#allocation7 + $0x60] sm:$0xff] %v574_v36  ;;  %1087 = vst [vmem:[#allocation7 + $0x68] sm:$0xff] %v575_v37  ;;  %v588_v62 = vsub.f32 %v64_v59, %v1728_v7  ;;  %v589_v63 = vsub.f32 %v65_v60, %v1730_v8  ;;  %v590_v0 = vsub.f32 %v66_v61, %v1728_v7  ;;  %v78_v23 = vld [vmem:[#allocation2 + $0x140] sm:$0xff]  ;;  %v79_v27 = vld [vmem:[#allocation2 + $0x148] sm:$0xff] }
  0x37   :  { %1088 = vst [vmem:[#allocation7 + $0x70] sm:$0xff] %v576_v38  ;;  %1089 = vst [vmem:[#allocation7 + $0x78] sm:$0xff] %v577_v39  ;;  %v591_v4 = vsub.f32 %v67_v1, %v1730_v8  ;;  %v592_v5 = vsub.f32 %v68_v2, %v1728_v7  ;;  %v593_v6 = vsub.f32 %v69_v3, %v1730_v8  ;;  %v80_v28 = vld [vmem:[#allocation2 + $0x150] sm:$0xff]  ;;  %v81_v29 = vld [vmem:[#allocation2 + $0x158] sm:$0xff] }
  0x38   :  { %1090 = vst [vmem:[#allocation7 + $0x80] sm:$0xff] %v578_v43  ;;  %1091 = vst [vmem:[#allocation7 + $0x88] sm:$0xff] %v579_v44  ;;  %v594_v12 = vsub.f32 %v70_v9, %v1728_v7  ;;  %v595_v13 = vsub.f32 %v71_v10, %v1730_v8  ;;  %v596_v14 = vsub.f32 %v72_v11, %v1728_v7  ;;  %v82_v33 = vld [vmem:[#allocation2 + $0x160] sm:$0xff]  ;;  %v83_v34 = vld [vmem:[#allocation2 + $0x168] sm:$0xff] }
  0x39   :  { %1092 = vst [vmem:[#allocation7 + $0x90] sm:$0xff] %v580_v45  ;;  %1093 = vst [vmem:[#allocation7 + $0x98] sm:$0xff] %v581_v46  ;;  %v597_v18 = vsub.f32 %v73_v15, %v1730_v8  ;;  %v598_v19 = vsub.f32 %v74_v16, %v1728_v7  ;;  %v599_v20 = vsub.f32 %v75_v17, %v1730_v8  ;;  %v84_v35 = vld [vmem:[#allocation2 + $0x170] sm:$0xff]  ;;  %v85_v39 = vld [vmem:[#allocation2 + $0x178] sm:$0xff] }
  0x3a   :  { %1094 = vst [vmem:[#allocation7 + $0xa0] sm:$0xff] %v582_v50  ;;  %1095 = vst [vmem:[#allocation7 + $0xa8] sm:$0xff] %v583_v51  ;;  %v600_v24 = vsub.f32 %v76_v21, %v1728_v7  ;;  %v601_v25 = vsub.f32 %v77_v22, %v1730_v8  ;;  %v602_v26 = vsub.f32 %v78_v23, %v1728_v7  ;;  %v86_v40 = vld [vmem:[#allocation2 + $0x180] sm:$0xff]  ;;  %v87_v41 = vld [vmem:[#allocation2 + $0x188] sm:$0xff] }
  0x3b   :  { %1096 = vst [vmem:[#allocation7 + $0xb0] sm:$0xff] %v584_v52  ;;  %1097 = vst [vmem:[#allocation7 + $0xb8] sm:$0xff] %v585_v56  ;;  %v603_v30 = vsub.f32 %v79_v27, %v1730_v8  ;;  %v604_v31 = vsub.f32 %v80_v28, %v1728_v7  ;;  %v605_v32 = vsub.f32 %v81_v29, %v1730_v8  ;;  %v88_v45 = vld [vmem:[#allocation2 + $0x190] sm:$0xff]  ;;  %v89_v46 = vld [vmem:[#allocation2 + $0x198] sm:$0xff] }
  0x3c   :  { %1098 = vst [vmem:[#allocation7 + $0xc0] sm:$0xff] %v586_v57  ;;  %1099 = vst [vmem:[#allocation7 + $0xc8] sm:$0xff] %v587_v58  ;;  %v606_v36 = vsub.f32 %v82_v33, %v1728_v7  ;;  %v607_v37 = vsub.f32 %v83_v34, %v1730_v8  ;;  %v608_v38 = vsub.f32 %v84_v35, %v1728_v7  ;;  %v90_v47 = vld [vmem:[#allocation2 + $0x1a0] sm:$0xff]  ;;  %v91_v51 = vld [vmem:[#allocation2 + $0x1a8] sm:$0xff] }
  0x3d   :  { %1100 = vst [vmem:[#allocation7 + $0xd0] sm:$0xff] %v588_v62  ;;  %1101 = vst [vmem:[#allocation7 + $0xd8] sm:$0xff] %v589_v63  ;;  %v609_v42 = vsub.f32 %v85_v39, %v1730_v8  ;;  %v610_v43 = vsub.f32 %v86_v40, %v1728_v7  ;;  %v611_v44 = vsub.f32 %v87_v41, %v1730_v8  ;;  %v92_v52 = vld [vmem:[#allocation2 + $0x1b0] sm:$0xff]  ;;  %v93_v53 = vld [vmem:[#allocation2 + $0x1b8] sm:$0xff] }
  0x3e   :  { %1102 = vst [vmem:[#allocation7 + $0xe0] sm:$0xff] %v590_v0  ;;  %1103 = vst [vmem:[#allocation7 + $0xe8] sm:$0xff] %v591_v4  ;;  %v612_v48 = vsub.f32 %v88_v45, %v1728_v7  ;;  %v613_v49 = vsub.f32 %v89_v46, %v1730_v8  ;;  %v614_v50 = vsub.f32 %v90_v47, %v1728_v7  ;;  %v94_v57 = vld [vmem:[#allocation2 + $0x1c0] sm:$0xff]  ;;  %v95_v58 = vld [vmem:[#allocation2 + $0x1c8] sm:$0xff] }
  0x3f   :  { %1104 = vst [vmem:[#allocation7 + $0xf0] sm:$0xff] %v592_v5  ;;  %1105 = vst [vmem:[#allocation7 + $0xf8] sm:$0xff] %v593_v6  ;;  %v615_v54 = vsub.f32 %v91_v51, %v1730_v8  ;;  %v616_v55 = vsub.f32 %v92_v52, %v1728_v7  ;;  %v617_v56 = vsub.f32 %v93_v53, %v1730_v8  ;;  %v96_v59 = vld [vmem:[#allocation2 + $0x1d0] sm:$0xff]  ;;  %v97_v63 = vld [vmem:[#allocation2 + $0x1d8] sm:$0xff] }
  0x40   :  { %1106 = vst [vmem:[#allocation7 + $0x100] sm:$0xff] %v594_v12  ;;  %1107 = vst [vmem:[#allocation7 + $0x108] sm:$0xff] %v595_v13  ;;  %v618_v60 = vsub.f32 %v94_v57, %v1728_v7  ;;  %v619_v61 = vsub.f32 %v95_v58, %v1730_v8  ;;  %v620_v62 = vsub.f32 %v96_v59, %v1728_v7  ;;  %v98_v0 = vld [vmem:[#allocation2 + $0x1e0] sm:$0xff]  ;;  %v99_v1 = vld [vmem:[#allocation2 + $0x1e8] sm:$0xff] }
  0x41   :  { %1108 = vst [vmem:[#allocation7 + $0x110] sm:$0xff] %v596_v14  ;;  %1109 = vst [vmem:[#allocation7 + $0x118] sm:$0xff] %v597_v18  ;;  %v621_v2 = vsub.f32 %v97_v63, %v1730_v8  ;;  %v622_v3 = vsub.f32 %v98_v0, %v1728_v7  ;;  %v623_v4 = vsub.f32 %v99_v1, %v1730_v8  ;;  %v100_v5 = vld [vmem:[#allocation2 + $0x1f0] sm:$0xff]  ;;  %v101_v6 = vld [vmem:[#allocation2 + $0x1f8] sm:$0xff] }
  0x42   :  { %1110 = vst [vmem:[#allocation7 + $0x120] sm:$0xff] %v598_v19  ;;  %1111 = vst [vmem:[#allocation7 + $0x128] sm:$0xff] %v599_v20  ;;  %v102_v9 = vld [vmem:[#allocation2 + $0x200] sm:$0xff]  ;;  %v624_v10 = vsub.f32 %v100_v5, %v1728_v7  ;;  %v625_v11 = vsub.f32 %v101_v6, %v1730_v8  ;;  %v103_v13 = vld [vmem:[#allocation2 + $0x208] sm:$0xff] }
  0x43   :  { %1112 = vst [vmem:[#allocation7 + $0x130] sm:$0xff] %v600_v24  ;;  %1113 = vst [vmem:[#allocation7 + $0x138] sm:$0xff] %v601_v25  ;;  %v626_v12 = vsub.f32 %v102_v9, %v1728_v7  ;;  %v104_v14 = vld [vmem:[#allocation2 + $0x210] sm:$0xff]  ;;  %v105_v15 = vld [vmem:[#allocation2 + $0x218] sm:$0xff]  ;;  %v627_v16 = vsub.f32 %v103_v13, %v1730_v8 }
  0x44   :  { %1114 = vst [vmem:[#allocation7 + $0x140] sm:$0xff] %v602_v26  ;;  %1115 = vst [vmem:[#allocation7 + $0x148] sm:$0xff] %v603_v30  ;;  %v628_v17 = vsub.f32 %v104_v14, %v1728_v7  ;;  %v629_v18 = vsub.f32 %v105_v15, %v1730_v8  ;;  %v106_v19 = vld [vmem:[#allocation2 + $0x220] sm:$0xff]  ;;  %v107_v20 = vld [vmem:[#allocation2 + $0x228] sm:$0xff] }
  0x45   :  { %1116 = vst [vmem:[#allocation7 + $0x150] sm:$0xff] %v604_v31  ;;  %1117 = vst [vmem:[#allocation7 + $0x158] sm:$0xff] %v605_v32  ;;  %v108_v21 = vld [vmem:[#allocation2 + $0x230] sm:$0xff]  ;;  %v630_v22 = vsub.f32 %v106_v19, %v1728_v7  ;;  %v631_v23 = vsub.f32 %v107_v20, %v1730_v8  ;;  %v109_v25 = vld [vmem:[#allocation2 + $0x238] sm:$0xff] }
  0x46   :  { %1118 = vst [vmem:[#allocation7 + $0x160] sm:$0xff] %v606_v36  ;;  %1119 = vst [vmem:[#allocation7 + $0x168] sm:$0xff] %v607_v37  ;;  %v632_v24 = vsub.f32 %v108_v21, %v1728_v7  ;;  %v110_v26 = vld [vmem:[#allocation2 + $0x240] sm:$0xff]  ;;  %v111_v27 = vld [vmem:[#allocation2 + $0x248] sm:$0xff]  ;;  %v633_v28 = vsub.f32 %v109_v25, %v1730_v8 }
  0x47   :  { %1120 = vst [vmem:[#allocation7 + $0x170] sm:$0xff] %v608_v38  ;;  %1121 = vst [vmem:[#allocation7 + $0x178] sm:$0xff] %v609_v42  ;;  %v634_v29 = vsub.f32 %v110_v26, %v1728_v7  ;;  %v635_v30 = vsub.f32 %v111_v27, %v1730_v8  ;;  %v112_v31 = vld [vmem:[#allocation2 + $0x250] sm:$0xff]  ;;  %v113_v32 = vld [vmem:[#allocation2 + $0x258] sm:$0xff] }
  0x48   :  { %1122 = vst [vmem:[#allocation7 + $0x180] sm:$0xff] %v610_v43  ;;  %1123 = vst [vmem:[#allocation7 + $0x188] sm:$0xff] %v611_v44  ;;  %v114_v33 = vld [vmem:[#allocation2 + $0x260] sm:$0xff]  ;;  %v636_v34 = vsub.f32 %v112_v31, %v1728_v7  ;;  %v637_v35 = vsub.f32 %v113_v32, %v1730_v8  ;;  %v115_v37 = vld [vmem:[#allocation2 + $0x268] sm:$0xff] }
  0x49   :  { %1124 = vst [vmem:[#allocation7 + $0x190] sm:$0xff] %v612_v48  ;;  %1125 = vst [vmem:[#allocation7 + $0x198] sm:$0xff] %v613_v49  ;;  %v638_v36 = vsub.f32 %v114_v33, %v1728_v7  ;;  %v116_v38 = vld [vmem:[#allocation2 + $0x270] sm:$0xff]  ;;  %v117_v39 = vld [vmem:[#allocation2 + $0x278] sm:$0xff]  ;;  %v639_v40 = vsub.f32 %v115_v37, %v1730_v8 }
  0x4a   :  { %1126 = vst [vmem:[#allocation7 + $0x1a0] sm:$0xff] %v614_v50  ;;  %1127 = vst [vmem:[#allocation7 + $0x1a8] sm:$0xff] %v615_v54  ;;  %v640_v41 = vsub.f32 %v116_v38, %v1728_v7  ;;  %v641_v42 = vsub.f32 %v117_v39, %v1730_v8  ;;  %v118_v43 = vld [vmem:[#allocation2 + $0x280] sm:$0xff]  ;;  %v119_v44 = vld [vmem:[#allocation2 + $0x288] sm:$0xff] }
  0x4b   :  { %1128 = vst [vmem:[#allocation7 + $0x1b0] sm:$0xff] %v616_v55  ;;  %1129 = vst [vmem:[#allocation7 + $0x1b8] sm:$0xff] %v617_v56  ;;  %v120_v45 = vld [vmem:[#allocation2 + $0x290] sm:$0xff]  ;;  %v642_v46 = vsub.f32 %v118_v43, %v1728_v7  ;;  %v643_v47 = vsub.f32 %v119_v44, %v1730_v8  ;;  %v121_v49 = vld [vmem:[#allocation2 + $0x298] sm:$0xff] }
  0x4c   :  { %1130 = vst [vmem:[#allocation7 + $0x1c0] sm:$0xff] %v618_v60  ;;  %1131 = vst [vmem:[#allocation7 + $0x1c8] sm:$0xff] %v619_v61  ;;  %v644_v48 = vsub.f32 %v120_v45, %v1728_v7  ;;  %v122_v50 = vld [vmem:[#allocation2 + $0x2a0] sm:$0xff]  ;;  %v123_v51 = vld [vmem:[#allocation2 + $0x2a8] sm:$0xff]  ;;  %v645_v52 = vsub.f32 %v121_v49, %v1730_v8 }
  0x4d   :  { %1132 = vst [vmem:[#allocation7 + $0x1d0] sm:$0xff] %v620_v62  ;;  %1133 = vst [vmem:[#allocation7 + $0x1d8] sm:$0xff] %v621_v2  ;;  %v646_v53 = vsub.f32 %v122_v50, %v1728_v7  ;;  %v647_v54 = vsub.f32 %v123_v51, %v1730_v8  ;;  %v124_v55 = vld [vmem:[#allocation2 + $0x2b0] sm:$0xff]  ;;  %v125_v56 = vld [vmem:[#allocation2 + $0x2b8] sm:$0xff] }
  0x4e   :  { %1134 = vst [vmem:[#allocation7 + $0x1e0] sm:$0xff] %v622_v3  ;;  %1135 = vst [vmem:[#allocation7 + $0x1e8] sm:$0xff] %v623_v4  ;;  %v126_v57 = vld [vmem:[#allocation2 + $0x2c0] sm:$0xff]  ;;  %v648_v58 = vsub.f32 %v124_v55, %v1728_v7  ;;  %v649_v59 = vsub.f32 %v125_v56, %v1730_v8  ;;  %v127_v61 = vld [vmem:[#allocation2 + $0x2c8] sm:$0xff] }
  0x4f   :  { %1136 = vst [vmem:[#allocation7 + $0x1f0] sm:$0xff] %v624_v10  ;;  %1137 = vst [vmem:[#allocation7 + $0x1f8] sm:$0xff] %v625_v11  ;;  %v650_v60 = vsub.f32 %v126_v57, %v1728_v7  ;;  %v128_v62 = vld [vmem:[#allocation2 + $0x2d0] sm:$0xff]  ;;  %v129_v63 = vld [vmem:[#allocation2 + $0x2d8] sm:$0xff]  ;;  %v651_v0 = vsub.f32 %v127_v61, %v1730_v8 }
  0x50   :  { %1138 = vst [vmem:[#allocation7 + $0x200] sm:$0xff] %v626_v12  ;;  %1139 = vst [vmem:[#allocation7 + $0x208] sm:$0xff] %v627_v16  ;;  %v652_v1 = vsub.f32 %v128_v62, %v1728_v7  ;;  %v653_v2 = vsub.f32 %v129_v63, %v1730_v8  ;;  %v130_v3 = vld [vmem:[#allocation2 + $0x2e0] sm:$0xff]  ;;  %v131_v4 = vld [vmem:[#allocation2 + $0x2e8] sm:$0xff] }
  0x51   :  { %1140 = vst [vmem:[#allocation7 + $0x210] sm:$0xff] %v628_v17  ;;  %1141 = vst [vmem:[#allocation7 + $0x218] sm:$0xff] %v629_v18  ;;  %v132_v5 = vld [vmem:[#allocation2 + $0x2f0] sm:$0xff]  ;;  %v654_v6 = vsub.f32 %v130_v3, %v1728_v7  ;;  %v655_v9 = vsub.f32 %v131_v4, %v1730_v8  ;;  %v133_v11 = vld [vmem:[#allocation2 + $0x2f8] sm:$0xff] }
  0x52   :  { %1142 = vst [vmem:[#allocation7 + $0x220] sm:$0xff] %v630_v22  ;;  %1143 = vst [vmem:[#allocation7 + $0x228] sm:$0xff] %v631_v23  ;;  %v656_v10 = vsub.f32 %v132_v5, %v1728_v7  ;;  %v134_v12 = vld [vmem:[#allocation2 + $0x300] sm:$0xff]  ;;  %v135_v13 = vld [vmem:[#allocation2 + $0x308] sm:$0xff]  ;;  %v657_v14 = vsub.f32 %v133_v11, %v1730_v8 }
  0x53   :  { %1144 = vst [vmem:[#allocation7 + $0x230] sm:$0xff] %v632_v24  ;;  %1145 = vst [vmem:[#allocation7 + $0x238] sm:$0xff] %v633_v28  ;;  %v658_v15 = vsub.f32 %v134_v12, %v1728_v7  ;;  %v659_v16 = vsub.f32 %v135_v13, %v1730_v8  ;;  %v136_v17 = vld [vmem:[#allocation2 + $0x310] sm:$0xff]  ;;  %v137_v18 = vld [vmem:[#allocation2 + $0x318] sm:$0xff] }
  0x54   :  { %1146 = vst [vmem:[#allocation7 + $0x240] sm:$0xff] %v634_v29  ;;  %1147 = vst [vmem:[#allocation7 + $0x248] sm:$0xff] %v635_v30  ;;  %v138_v19 = vld [vmem:[#allocation2 + $0x320] sm:$0xff]  ;;  %v660_v20 = vsub.f32 %v136_v17, %v1728_v7  ;;  %v661_v21 = vsub.f32 %v137_v18, %v1730_v8  ;;  %v139_v23 = vld [vmem:[#allocation2 + $0x328] sm:$0xff] }
  0x55   :  { %1148 = vst [vmem:[#allocation7 + $0x250] sm:$0xff] %v636_v34  ;;  %1149 = vst [vmem:[#allocation7 + $0x258] sm:$0xff] %v637_v35  ;;  %v662_v22 = vsub.f32 %v138_v19, %v1728_v7  ;;  %v140_v24 = vld [vmem:[#allocation2 + $0x330] sm:$0xff]  ;;  %v141_v25 = vld [vmem:[#allocation2 + $0x338] sm:$0xff]  ;;  %v663_v26 = vsub.f32 %v139_v23, %v1730_v8 }
  0x56   :  { %1150 = vst [vmem:[#allocation7 + $0x260] sm:$0xff] %v638_v36  ;;  %1151 = vst [vmem:[#allocation7 + $0x268] sm:$0xff] %v639_v40  ;;  %v664_v27 = vsub.f32 %v140_v24, %v1728_v7  ;;  %v665_v28 = vsub.f32 %v141_v25, %v1730_v8  ;;  %v142_v29 = vld [vmem:[#allocation2 + $0x340] sm:$0xff]  ;;  %v143_v30 = vld [vmem:[#allocation2 + $0x348] sm:$0xff] }
  0x57   :  { %1152 = vst [vmem:[#allocation7 + $0x270] sm:$0xff] %v640_v41  ;;  %1153 = vst [vmem:[#allocation7 + $0x278] sm:$0xff] %v641_v42  ;;  %v144_v31 = vld [vmem:[#allocation2 + $0x350] sm:$0xff]  ;;  %v666_v32 = vsub.f32 %v142_v29, %v1728_v7  ;;  %v667_v33 = vsub.f32 %v143_v30, %v1730_v8  ;;  %v145_v35 = vld [vmem:[#allocation2 + $0x358] sm:$0xff] }
  0x58   :  { %1154 = vst [vmem:[#allocation7 + $0x280] sm:$0xff] %v642_v46  ;;  %1155 = vst [vmem:[#allocation7 + $0x288] sm:$0xff] %v643_v47  ;;  %v668_v34 = vsub.f32 %v144_v31, %v1728_v7  ;;  %v146_v36 = vld [vmem:[#allocation2 + $0x360] sm:$0xff]  ;;  %v147_v37 = vld [vmem:[#allocation2 + $0x368] sm:$0xff]  ;;  %v669_v38 = vsub.f32 %v145_v35, %v1730_v8 }
  0x59   :  { %1156 = vst [vmem:[#allocation7 + $0x290] sm:$0xff] %v644_v48  ;;  %1157 = vst [vmem:[#allocation7 + $0x298] sm:$0xff] %v645_v52  ;;  %v670_v39 = vsub.f32 %v146_v36, %v1728_v7  ;;  %v671_v40 = vsub.f32 %v147_v37, %v1730_v8  ;;  %v148_v41 = vld [vmem:[#allocation2 + $0x370] sm:$0xff]  ;;  %v149_v42 = vld [vmem:[#allocation2 + $0x378] sm:$0xff] }
  0x5a   :  { %1158 = vst [vmem:[#allocation7 + $0x2a0] sm:$0xff] %v646_v53  ;;  %1159 = vst [vmem:[#allocation7 + $0x2a8] sm:$0xff] %v647_v54  ;;  %v150_v43 = vld [vmem:[#allocation2 + $0x380] sm:$0xff]  ;;  %v672_v44 = vsub.f32 %v148_v41, %v1728_v7  ;;  %v673_v45 = vsub.f32 %v149_v42, %v1730_v8  ;;  %v151_v47 = vld [vmem:[#allocation2 + $0x388] sm:$0xff] }
  0x5b   :  { %1160 = vst [vmem:[#allocation7 + $0x2b0] sm:$0xff] %v648_v58  ;;  %1161 = vst [vmem:[#allocation7 + $0x2b8] sm:$0xff] %v649_v59  ;;  %v674_v46 = vsub.f32 %v150_v43, %v1728_v7  ;;  %v152_v48 = vld [vmem:[#allocation2 + $0x390] sm:$0xff]  ;;  %v153_v49 = vld [vmem:[#allocation2 + $0x398] sm:$0xff]  ;;  %v675_v50 = vsub.f32 %v151_v47, %v1730_v8 }
  0x5c   :  { %1162 = vst [vmem:[#allocation7 + $0x2c0] sm:$0xff] %v650_v60  ;;  %1163 = vst [vmem:[#allocation7 + $0x2c8] sm:$0xff] %v651_v0  ;;  %v676_v51 = vsub.f32 %v152_v48, %v1728_v7  ;;  %v677_v52 = vsub.f32 %v153_v49, %v1730_v8  ;;  %v154_v53 = vld [vmem:[#allocation2 + $0x3a0] sm:$0xff]  ;;  %v155_v54 = vld [vmem:[#allocation2 + $0x3a8] sm:$0xff] }
  0x5d   :  { %1164 = vst [vmem:[#allocation7 + $0x2d0] sm:$0xff] %v652_v1  ;;  %1165 = vst [vmem:[#allocation7 + $0x2d8] sm:$0xff] %v653_v2  ;;  %v156_v55 = vld [vmem:[#allocation2 + $0x3b0] sm:$0xff]  ;;  %v678_v56 = vsub.f32 %v154_v53, %v1728_v7  ;;  %v679_v57 = vsub.f32 %v155_v54, %v1730_v8  ;;  %v157_v59 = vld [vmem:[#allocation2 + $0x3b8] sm:$0xff] }
  0x5e   :  { %1166 = vst [vmem:[#allocation7 + $0x2e0] sm:$0xff] %v654_v6  ;;  %1167 = vst [vmem:[#allocation7 + $0x2e8] sm:$0xff] %v655_v9  ;;  %v680_v58 = vsub.f32 %v156_v55, %v1728_v7  ;;  %v158_v60 = vld [vmem:[#allocation2 + $0x3c0] sm:$0xff]  ;;  %v159_v61 = vld [vmem:[#allocation2 + $0x3c8] sm:$0xff]  ;;  %v681_v62 = vsub.f32 %v157_v59, %v1730_v8 }
  0x5f   :  { %1168 = vst [vmem:[#allocation7 + $0x2f0] sm:$0xff] %v656_v10  ;;  %1169 = vst [vmem:[#allocation7 + $0x2f8] sm:$0xff] %v657_v14  ;;  %v682_v63 = vsub.f32 %v158_v60, %v1728_v7  ;;  %v683_v0 = vsub.f32 %v159_v61, %v1730_v8  ;;  %v160_v1 = vld [vmem:[#allocation2 + $0x3d0] sm:$0xff]  ;;  %v161_v2 = vld [vmem:[#allocation2 + $0x3d8] sm:$0xff] }
  0x60   :  { %1170 = vst [vmem:[#allocation7 + $0x300] sm:$0xff] %v658_v15  ;;  %1171 = vst [vmem:[#allocation7 + $0x308] sm:$0xff] %v659_v16  ;;  %v162_v3 = vld [vmem:[#allocation2 + $0x3e0] sm:$0xff]  ;;  %v684_v4 = vsub.f32 %v160_v1, %v1728_v7  ;;  %v685_v5 = vsub.f32 %v161_v2, %v1730_v8  ;;  %v163_v9 = vld [vmem:[#allocation2 + $0x3e8] sm:$0xff] }
  0x61   :  { %1172 = vst [vmem:[#allocation7 + $0x310] sm:$0xff] %v660_v20  ;;  %1173 = vst [vmem:[#allocation7 + $0x318] sm:$0xff] %v661_v21  ;;  %v686_v6 = vsub.f32 %v162_v3, %v1728_v7  ;;  %v164_v10 = vld [vmem:[#allocation2 + $0x3f0] sm:$0xff]  ;;  %v165_v11 = vld [vmem:[#allocation2 + $0x3f8] sm:$0xff]  ;;  %v687_v12 = vsub.f32 %v163_v9, %v1730_v8 }
  0x62   :  { %1174 = vst [vmem:[#allocation7 + $0x320] sm:$0xff] %v662_v22  ;;  %1175 = vst [vmem:[#allocation7 + $0x328] sm:$0xff] %v663_v26  ;;  %v688_v13 = vsub.f32 %v164_v10, %v1728_v7  ;;  %v689_v14 = vsub.f32 %v165_v11, %v1730_v8  ;;  %v166_v15 = vld [vmem:[#allocation2 + $0x400] sm:$0xff]  ;;  %v167_v16 = vld [vmem:[#allocation2 + $0x408] sm:$0xff] }
  0x63   :  { %1176 = vst [vmem:[#allocation7 + $0x330] sm:$0xff] %v664_v27  ;;  %1177 = vst [vmem:[#allocation7 + $0x338] sm:$0xff] %v665_v28  ;;  %v168_v17 = vld [vmem:[#allocation2 + $0x410] sm:$0xff]  ;;  %v690_v18 = vsub.f32 %v166_v15, %v1728_v7  ;;  %v691_v19 = vsub.f32 %v167_v16, %v1730_v8  ;;  %v169_v21 = vld [vmem:[#allocation2 + $0x418] sm:$0xff] }
  0x64   :  { %1178 = vst [vmem:[#allocation7 + $0x340] sm:$0xff] %v666_v32  ;;  %1179 = vst [vmem:[#allocation7 + $0x348] sm:$0xff] %v667_v33  ;;  %v692_v20 = vsub.f32 %v168_v17, %v1728_v7  ;;  %v170_v22 = vld [vmem:[#allocation2 + $0x420] sm:$0xff]  ;;  %v171_v23 = vld [vmem:[#allocation2 + $0x428] sm:$0xff]  ;;  %v693_v24 = vsub.f32 %v169_v21, %v1730_v8 }
  0x65   :  { %1180 = vst [vmem:[#allocation7 + $0x350] sm:$0xff] %v668_v34  ;;  %1181 = vst [vmem:[#allocation7 + $0x358] sm:$0xff] %v669_v38  ;;  %v694_v25 = vsub.f32 %v170_v22, %v1728_v7  ;;  %v695_v26 = vsub.f32 %v171_v23, %v1730_v8  ;;  %v172_v27 = vld [vmem:[#allocation2 + $0x430] sm:$0xff]  ;;  %v173_v28 = vld [vmem:[#allocation2 + $0x438] sm:$0xff] }
  0x66   :  { %1182 = vst [vmem:[#allocation7 + $0x360] sm:$0xff] %v670_v39  ;;  %1183 = vst [vmem:[#allocation7 + $0x368] sm:$0xff] %v671_v40  ;;  %v174_v29 = vld [vmem:[#allocation2 + $0x440] sm:$0xff]  ;;  %v696_v30 = vsub.f32 %v172_v27, %v1728_v7  ;;  %v697_v31 = vsub.f32 %v173_v28, %v1730_v8  ;;  %v175_v33 = vld [vmem:[#allocation2 + $0x448] sm:$0xff] }
  0x67   :  { %1184 = vst [vmem:[#allocation7 + $0x370] sm:$0xff] %v672_v44  ;;  %1185 = vst [vmem:[#allocation7 + $0x378] sm:$0xff] %v673_v45  ;;  %v698_v32 = vsub.f32 %v174_v29, %v1728_v7  ;;  %v176_v34 = vld [vmem:[#allocation2 + $0x450] sm:$0xff]  ;;  %v177_v35 = vld [vmem:[#allocation2 + $0x458] sm:$0xff]  ;;  %v699_v36 = vsub.f32 %v175_v33, %v1730_v8 }
  0x68   :  { %1186 = vst [vmem:[#allocation7 + $0x380] sm:$0xff] %v674_v46  ;;  %1187 = vst [vmem:[#allocation7 + $0x388] sm:$0xff] %v675_v50  ;;  %v700_v37 = vsub.f32 %v176_v34, %v1728_v7  ;;  %v701_v38 = vsub.f32 %v177_v35, %v1730_v8  ;;  %v178_v39 = vld [vmem:[#allocation2 + $0x460] sm:$0xff]  ;;  %v179_v40 = vld [vmem:[#allocation2 + $0x468] sm:$0xff] }
  0x69   :  { %1188 = vst [vmem:[#allocation7 + $0x390] sm:$0xff] %v676_v51  ;;  %1189 = vst [vmem:[#allocation7 + $0x398] sm:$0xff] %v677_v52  ;;  %v180_v41 = vld [vmem:[#allocation2 + $0x470] sm:$0xff]  ;;  %v702_v42 = vsub.f32 %v178_v39, %v1728_v7  ;;  %v703_v43 = vsub.f32 %v179_v40, %v1730_v8  ;;  %v181_v45 = vld [vmem:[#allocation2 + $0x478] sm:$0xff] }
  0x6a   :  { %1190 = vst [vmem:[#allocation7 + $0x3a0] sm:$0xff] %v678_v56  ;;  %1191 = vst [vmem:[#allocation7 + $0x3a8] sm:$0xff] %v679_v57  ;;  %v704_v44 = vsub.f32 %v180_v41, %v1728_v7  ;;  %v182_v46 = vld [vmem:[#allocation2 + $0x480] sm:$0xff]  ;;  %v183_v47 = vld [vmem:[#allocation2 + $0x488] sm:$0xff]  ;;  %v705_v48 = vsub.f32 %v181_v45, %v1730_v8 }
  0x6b   :  { %1192 = vst [vmem:[#allocation7 + $0x3b0] sm:$0xff] %v680_v58  ;;  %1193 = vst [vmem:[#allocation7 + $0x3b8] sm:$0xff] %v681_v62  ;;  %v706_v49 = vsub.f32 %v182_v46, %v1728_v7  ;;  %v707_v50 = vsub.f32 %v183_v47, %v1730_v8  ;;  %v184_v51 = vld [vmem:[#allocation2 + $0x490] sm:$0xff]  ;;  %v185_v52 = vld [vmem:[#allocation2 + $0x498] sm:$0xff] }
  0x6c   :  { %1194 = vst [vmem:[#allocation7 + $0x3c0] sm:$0xff] %v682_v63  ;;  %1195 = vst [vmem:[#allocation7 + $0x3c8] sm:$0xff] %v683_v0  ;;  %v186_v53 = vld [vmem:[#allocation2 + $0x4a0] sm:$0xff]  ;;  %v708_v54 = vsub.f32 %v184_v51, %v1728_v7  ;;  %v709_v55 = vsub.f32 %v185_v52, %v1730_v8  ;;  %v187_v57 = vld [vmem:[#allocation2 + $0x4a8] sm:$0xff] }
  0x6d   :  { %1196 = vst [vmem:[#allocation7 + $0x3d0] sm:$0xff] %v684_v4  ;;  %1197 = vst [vmem:[#allocation7 + $0x3d8] sm:$0xff] %v685_v5  ;;  %v710_v56 = vsub.f32 %v186_v53, %v1728_v7  ;;  %v188_v58 = vld [vmem:[#allocation2 + $0x4b0] sm:$0xff]  ;;  %v189_v59 = vld [vmem:[#allocation2 + $0x4b8] sm:$0xff]  ;;  %v711_v60 = vsub.f32 %v187_v57, %v1730_v8 }
  0x6e   :  { %1198 = vst [vmem:[#allocation7 + $0x3e0] sm:$0xff] %v686_v6  ;;  %1199 = vst [vmem:[#allocation7 + $0x3e8] sm:$0xff] %v687_v12  ;;  %v712_v61 = vsub.f32 %v188_v58, %v1728_v7  ;;  %v713_v62 = vsub.f32 %v189_v59, %v1730_v8  ;;  %v190_v63 = vld [vmem:[#allocation2 + $0x4c0] sm:$0xff]  ;;  %v191_v0 = vld [vmem:[#allocation2 + $0x4c8] sm:$0xff] }
  0x6f   :  { %1200 = vst [vmem:[#allocation7 + $0x3f0] sm:$0xff] %v688_v13  ;;  %1201 = vst [vmem:[#allocation7 + $0x3f8] sm:$0xff] %v689_v14  ;;  %v192_v1 = vld [vmem:[#allocation2 + $0x4d0] sm:$0xff]  ;;  %v714_v2 = vsub.f32 %v190_v63, %v1728_v7  ;;  %v715_v3 = vsub.f32 %v191_v0, %v1730_v8  ;;  %v193_v5 = vld [vmem:[#allocation2 + $0x4d8] sm:$0xff] }
  0x70   :  { %1202 = vst [vmem:[#allocation7 + $0x400] sm:$0xff] %v690_v18  ;;  %1203 = vst [vmem:[#allocation7 + $0x408] sm:$0xff] %v691_v19  ;;  %v716_v4 = vsub.f32 %v192_v1, %v1728_v7  ;;  %v194_v6 = vld [vmem:[#allocation2 + $0x4e0] sm:$0xff]  ;;  %v195_v9 = vld [vmem:[#allocation2 + $0x4e8] sm:$0xff]  ;;  %v717_v10 = vsub.f32 %v193_v5, %v1730_v8 }
  0x71   :  { %1204 = vst [vmem:[#allocation7 + $0x410] sm:$0xff] %v692_v20  ;;  %1205 = vst [vmem:[#allocation7 + $0x418] sm:$0xff] %v693_v24  ;;  %v718_v11 = vsub.f32 %v194_v6, %v1728_v7  ;;  %v719_v12 = vsub.f32 %v195_v9, %v1730_v8  ;;  %v196_v13 = vld [vmem:[#allocation2 + $0x4f0] sm:$0xff]  ;;  %v197_v14 = vld [vmem:[#allocation2 + $0x4f8] sm:$0xff] }
  0x72   :  { %1206 = vst [vmem:[#allocation7 + $0x420] sm:$0xff] %v694_v25  ;;  %1207 = vst [vmem:[#allocation7 + $0x428] sm:$0xff] %v695_v26  ;;  %v198_v15 = vld [vmem:[#allocation2 + $0x500] sm:$0xff]  ;;  %v720_v16 = vsub.f32 %v196_v13, %v1728_v7  ;;  %v721_v17 = vsub.f32 %v197_v14, %v1730_v8  ;;  %v199_v19 = vld [vmem:[#allocation2 + $0x508] sm:$0xff] }
  0x73   :  { %1208 = vst [vmem:[#allocation7 + $0x430] sm:$0xff] %v696_v30  ;;  %1209 = vst [vmem:[#allocation7 + $0x438] sm:$0xff] %v697_v31  ;;  %v722_v18 = vsub.f32 %v198_v15, %v1728_v7  ;;  %v200_v20 = vld [vmem:[#allocation2 + $0x510] sm:$0xff]  ;;  %v201_v21 = vld [vmem:[#allocation2 + $0x518] sm:$0xff]  ;;  %v723_v22 = vsub.f32 %v199_v19, %v1730_v8 }
  0x74   :  { %1210 = vst [vmem:[#allocation7 + $0x440] sm:$0xff] %v698_v32  ;;  %1211 = vst [vmem:[#allocation7 + $0x448] sm:$0xff] %v699_v36  ;;  %v724_v23 = vsub.f32 %v200_v20, %v1728_v7  ;;  %v725_v24 = vsub.f32 %v201_v21, %v1730_v8  ;;  %v202_v25 = vld [vmem:[#allocation2 + $0x520] sm:$0xff]  ;;  %v203_v26 = vld [vmem:[#allocation2 + $0x528] sm:$0xff] }
  0x75   :  { %1212 = vst [vmem:[#allocation7 + $0x450] sm:$0xff] %v700_v37  ;;  %1213 = vst [vmem:[#allocation7 + $0x458] sm:$0xff] %v701_v38  ;;  %v204_v27 = vld [vmem:[#allocation2 + $0x530] sm:$0xff]  ;;  %v726_v28 = vsub.f32 %v202_v25, %v1728_v7  ;;  %v727_v29 = vsub.f32 %v203_v26, %v1730_v8  ;;  %v205_v31 = vld [vmem:[#allocation2 + $0x538] sm:$0xff] }
  0x76   :  { %1214 = vst [vmem:[#allocation7 + $0x460] sm:$0xff] %v702_v42  ;;  %1215 = vst [vmem:[#allocation7 + $0x468] sm:$0xff] %v703_v43  ;;  %v728_v30 = vsub.f32 %v204_v27, %v1728_v7  ;;  %v206_v32 = vld [vmem:[#allocation2 + $0x540] sm:$0xff]  ;;  %v207_v33 = vld [vmem:[#allocation2 + $0x548] sm:$0xff]  ;;  %v729_v34 = vsub.f32 %v205_v31, %v1730_v8 }
  0x77   :  { %1216 = vst [vmem:[#allocation7 + $0x470] sm:$0xff] %v704_v44  ;;  %1217 = vst [vmem:[#allocation7 + $0x478] sm:$0xff] %v705_v48  ;;  %v730_v35 = vsub.f32 %v206_v32, %v1728_v7  ;;  %v731_v36 = vsub.f32 %v207_v33, %v1730_v8  ;;  %v208_v37 = vld [vmem:[#allocation2 + $0x550] sm:$0xff]  ;;  %v209_v38 = vld [vmem:[#allocation2 + $0x558] sm:$0xff] }
  0x78   :  { %1218 = vst [vmem:[#allocation7 + $0x480] sm:$0xff] %v706_v49  ;;  %1219 = vst [vmem:[#allocation7 + $0x488] sm:$0xff] %v707_v50  ;;  %v210_v39 = vld [vmem:[#allocation2 + $0x560] sm:$0xff]  ;;  %v732_v40 = vsub.f32 %v208_v37, %v1728_v7  ;;  %v733_v41 = vsub.f32 %v209_v38, %v1730_v8  ;;  %v211_v43 = vld [vmem:[#allocation2 + $0x568] sm:$0xff] }
  0x79   :  { %1220 = vst [vmem:[#allocation7 + $0x490] sm:$0xff] %v708_v54  ;;  %1221 = vst [vmem:[#allocation7 + $0x498] sm:$0xff] %v709_v55  ;;  %v734_v42 = vsub.f32 %v210_v39, %v1728_v7  ;;  %v212_v44 = vld [vmem:[#allocation2 + $0x570] sm:$0xff]  ;;  %v213_v45 = vld [vmem:[#allocation2 + $0x578] sm:$0xff]  ;;  %v735_v46 = vsub.f32 %v211_v43, %v1730_v8 }
  0x7a   :  { %1222 = vst [vmem:[#allocation7 + $0x4a0] sm:$0xff] %v710_v56  ;;  %1223 = vst [vmem:[#allocation7 + $0x4a8] sm:$0xff] %v711_v60  ;;  %v736_v47 = vsub.f32 %v212_v44, %v1728_v7  ;;  %v737_v48 = vsub.f32 %v213_v45, %v1730_v8  ;;  %v214_v49 = vld [vmem:[#allocation2 + $0x580] sm:$0xff]  ;;  %v215_v50 = vld [vmem:[#allocation2 + $0x588] sm:$0xff] }
  0x7b   :  { %1224 = vst [vmem:[#allocation7 + $0x4b0] sm:$0xff] %v712_v61  ;;  %1225 = vst [vmem:[#allocation7 + $0x4b8] sm:$0xff] %v713_v62  ;;  %v216_v51 = vld [vmem:[#allocation2 + $0x590] sm:$0xff]  ;;  %v738_v52 = vsub.f32 %v214_v49, %v1728_v7  ;;  %v739_v53 = vsub.f32 %v215_v50, %v1730_v8  ;;  %v217_v55 = vld [vmem:[#allocation2 + $0x598] sm:$0xff] }
  0x7c   :  { %1226 = vst [vmem:[#allocation7 + $0x4c0] sm:$0xff] %v714_v2  ;;  %1227 = vst [vmem:[#allocation7 + $0x4c8] sm:$0xff] %v715_v3  ;;  %v740_v54 = vsub.f32 %v216_v51, %v1728_v7  ;;  %v218_v56 = vld [vmem:[#allocation2 + $0x5a0] sm:$0xff]  ;;  %v219_v57 = vld [vmem:[#allocation2 + $0x5a8] sm:$0xff]  ;;  %v741_v58 = vsub.f32 %v217_v55, %v1730_v8 }
  0x7d   :  { %1228 = vst [vmem:[#allocation7 + $0x4d0] sm:$0xff] %v716_v4  ;;  %1229 = vst [vmem:[#allocation7 + $0x4d8] sm:$0xff] %v717_v10  ;;  %v742_v59 = vsub.f32 %v218_v56, %v1728_v7  ;;  %v743_v60 = vsub.f32 %v219_v57, %v1730_v8  ;;  %v220_v61 = vld [vmem:[#allocation2 + $0x5b0] sm:$0xff]  ;;  %v221_v62 = vld [vmem:[#allocation2 + $0x5b8] sm:$0xff] }
  0x7e   :  { %1230 = vst [vmem:[#allocation7 + $0x4e0] sm:$0xff] %v718_v11  ;;  %1231 = vst [vmem:[#allocation7 + $0x4e8] sm:$0xff] %v719_v12  ;;  %v222_v63 = vld [vmem:[#allocation2 + $0x5c0] sm:$0xff]  ;;  %v744_v0 = vsub.f32 %v220_v61, %v1728_v7  ;;  %v745_v1 = vsub.f32 %v221_v62, %v1730_v8  ;;  %v223_v3 = vld [vmem:[#allocation2 + $0x5c8] sm:$0xff] }
  0x7f   :  { %1232 = vst [vmem:[#allocation7 + $0x4f0] sm:$0xff] %v720_v16  ;;  %1233 = vst [vmem:[#allocation7 + $0x4f8] sm:$0xff] %v721_v17  ;;  %v746_v2 = vsub.f32 %v222_v63, %v1728_v7  ;;  %v224_v4 = vld [vmem:[#allocation2 + $0x5d0] sm:$0xff]  ;;  %v225_v5 = vld [vmem:[#allocation2 + $0x5d8] sm:$0xff]  ;;  %v747_v6 = vsub.f32 %v223_v3, %v1730_v8 }
  0x80   :  { %1234 = vst [vmem:[#allocation7 + $0x500] sm:$0xff] %v722_v18  ;;  %1235 = vst [vmem:[#allocation7 + $0x508] sm:$0xff] %v723_v22  ;;  %v748_v9 = vsub.f32 %v224_v4, %v1728_v7  ;;  %v749_v10 = vsub.f32 %v225_v5, %v1730_v8  ;;  %v226_v11 = vld [vmem:[#allocation2 + $0x5e0] sm:$0xff]  ;;  %v227_v12 = vld [vmem:[#allocation2 + $0x5e8] sm:$0xff] }
  0x81   :  { %1236 = vst [vmem:[#allocation7 + $0x510] sm:$0xff] %v724_v23  ;;  %1237 = vst [vmem:[#allocation7 + $0x518] sm:$0xff] %v725_v24  ;;  %v228_v13 = vld [vmem:[#allocation2 + $0x5f0] sm:$0xff]  ;;  %v750_v14 = vsub.f32 %v226_v11, %v1728_v7  ;;  %v751_v15 = vsub.f32 %v227_v12, %v1730_v8  ;;  %v229_v17 = vld [vmem:[#allocation2 + $0x5f8] sm:$0xff] }
  0x82   :  { %1238 = vst [vmem:[#allocation7 + $0x520] sm:$0xff] %v726_v28  ;;  %1239 = vst [vmem:[#allocation7 + $0x528] sm:$0xff] %v727_v29  ;;  %v752_v16 = vsub.f32 %v228_v13, %v1728_v7  ;;  %v230_v18 = vld [vmem:[#allocation2 + $0x600] sm:$0xff]  ;;  %v231_v19 = vld [vmem:[#allocation2 + $0x608] sm:$0xff]  ;;  %v753_v20 = vsub.f32 %v229_v17, %v1730_v8 }
  0x83   :  { %1240 = vst [vmem:[#allocation7 + $0x530] sm:$0xff] %v728_v30  ;;  %1241 = vst [vmem:[#allocation7 + $0x538] sm:$0xff] %v729_v34  ;;  %v754_v21 = vsub.f32 %v230_v18, %v1728_v7  ;;  %v755_v22 = vsub.f32 %v231_v19, %v1730_v8  ;;  %v232_v23 = vld [vmem:[#allocation2 + $0x610] sm:$0xff]  ;;  %v233_v24 = vld [vmem:[#allocation2 + $0x618] sm:$0xff] }
  0x84   :  { %1242 = vst [vmem:[#allocation7 + $0x540] sm:$0xff] %v730_v35  ;;  %1243 = vst [vmem:[#allocation7 + $0x548] sm:$0xff] %v731_v36  ;;  %v234_v25 = vld [vmem:[#allocation2 + $0x620] sm:$0xff]  ;;  %v756_v26 = vsub.f32 %v232_v23, %v1728_v7  ;;  %v757_v27 = vsub.f32 %v233_v24, %v1730_v8  ;;  %v235_v29 = vld [vmem:[#allocation2 + $0x628] sm:$0xff] }
  0x85   :  { %1244 = vst [vmem:[#allocation7 + $0x550] sm:$0xff] %v732_v40  ;;  %1245 = vst [vmem:[#allocation7 + $0x558] sm:$0xff] %v733_v41  ;;  %v758_v28 = vsub.f32 %v234_v25, %v1728_v7  ;;  %v236_v30 = vld [vmem:[#allocation2 + $0x630] sm:$0xff]  ;;  %v237_v31 = vld [vmem:[#allocation2 + $0x638] sm:$0xff]  ;;  %v759_v32 = vsub.f32 %v235_v29, %v1730_v8 }
  0x86   :  { %1246 = vst [vmem:[#allocation7 + $0x560] sm:$0xff] %v734_v42  ;;  %1247 = vst [vmem:[#allocation7 + $0x568] sm:$0xff] %v735_v46  ;;  %v760_v33 = vsub.f32 %v236_v30, %v1728_v7  ;;  %v761_v34 = vsub.f32 %v237_v31, %v1730_v8  ;;  %v238_v35 = vld [vmem:[#allocation2 + $0x640] sm:$0xff]  ;;  %v239_v36 = vld [vmem:[#allocation2 + $0x648] sm:$0xff] }
  0x87   :  { %1248 = vst [vmem:[#allocation7 + $0x570] sm:$0xff] %v736_v47  ;;  %1249 = vst [vmem:[#allocation7 + $0x578] sm:$0xff] %v737_v48  ;;  %v240_v37 = vld [vmem:[#allocation2 + $0x650] sm:$0xff]  ;;  %v762_v38 = vsub.f32 %v238_v35, %v1728_v7  ;;  %v763_v39 = vsub.f32 %v239_v36, %v1730_v8  ;;  %v241_v41 = vld [vmem:[#allocation2 + $0x658] sm:$0xff] }
  0x88   :  { %1250 = vst [vmem:[#allocation7 + $0x580] sm:$0xff] %v738_v52  ;;  %1251 = vst [vmem:[#allocation7 + $0x588] sm:$0xff] %v739_v53  ;;  %v764_v40 = vsub.f32 %v240_v37, %v1728_v7  ;;  %v242_v42 = vld [vmem:[#allocation2 + $0x660] sm:$0xff]  ;;  %v243_v43 = vld [vmem:[#allocation2 + $0x668] sm:$0xff]  ;;  %v765_v44 = vsub.f32 %v241_v41, %v1730_v8 }
  0x89   :  { %1252 = vst [vmem:[#allocation7 + $0x590] sm:$0xff] %v740_v54  ;;  %1253 = vst [vmem:[#allocation7 + $0x598] sm:$0xff] %v741_v58  ;;  %v766_v45 = vsub.f32 %v242_v42, %v1728_v7  ;;  %v767_v46 = vsub.f32 %v243_v43, %v1730_v8  ;;  %v244_v47 = vld [vmem:[#allocation2 + $0x670] sm:$0xff]  ;;  %v245_v48 = vld [vmem:[#allocation2 + $0x678] sm:$0xff] }
  0x8a   :  { %1254 = vst [vmem:[#allocation7 + $0x5a0] sm:$0xff] %v742_v59  ;;  %1255 = vst [vmem:[#allocation7 + $0x5a8] sm:$0xff] %v743_v60  ;;  %v246_v49 = vld [vmem:[#allocation2 + $0x680] sm:$0xff]  ;;  %v768_v50 = vsub.f32 %v244_v47, %v1728_v7  ;;  %v769_v51 = vsub.f32 %v245_v48, %v1730_v8  ;;  %v247_v53 = vld [vmem:[#allocation2 + $0x688] sm:$0xff] }
  0x8b   :  { %1256 = vst [vmem:[#allocation7 + $0x5b0] sm:$0xff] %v744_v0  ;;  %1257 = vst [vmem:[#allocation7 + $0x5b8] sm:$0xff] %v745_v1  ;;  %v770_v52 = vsub.f32 %v246_v49, %v1728_v7  ;;  %v248_v54 = vld [vmem:[#allocation2 + $0x690] sm:$0xff]  ;;  %v249_v55 = vld [vmem:[#allocation2 + $0x698] sm:$0xff]  ;;  %v771_v56 = vsub.f32 %v247_v53, %v1730_v8 }
  0x8c   :  { %1258 = vst [vmem:[#allocation7 + $0x5c0] sm:$0xff] %v746_v2  ;;  %1259 = vst [vmem:[#allocation7 + $0x5c8] sm:$0xff] %v747_v6  ;;  %v772_v57 = vsub.f32 %v248_v54, %v1728_v7  ;;  %v773_v58 = vsub.f32 %v249_v55, %v1730_v8  ;;  %v250_v59 = vld [vmem:[#allocation2 + $0x6a0] sm:$0xff]  ;;  %v251_v60 = vld [vmem:[#allocation2 + $0x6a8] sm:$0xff] }
  0x8d   :  { %1260 = vst [vmem:[#allocation7 + $0x5d0] sm:$0xff] %v748_v9  ;;  %1261 = vst [vmem:[#allocation7 + $0x5d8] sm:$0xff] %v749_v10  ;;  %v252_v61 = vld [vmem:[#allocation2 + $0x6b0] sm:$0xff]  ;;  %v774_v62 = vsub.f32 %v250_v59, %v1728_v7  ;;  %v775_v63 = vsub.f32 %v251_v60, %v1730_v8  ;;  %v253_v1 = vld [vmem:[#allocation2 + $0x6b8] sm:$0xff] }
  0x8e   :  { %1262 = vst [vmem:[#allocation7 + $0x5e0] sm:$0xff] %v750_v14  ;;  %1263 = vst [vmem:[#allocation7 + $0x5e8] sm:$0xff] %v751_v15  ;;  %v776_v0 = vsub.f32 %v252_v61, %v1728_v7  ;;  %v254_v2 = vld [vmem:[#allocation2 + $0x6c0] sm:$0xff]  ;;  %v255_v3 = vld [vmem:[#allocation2 + $0x6c8] sm:$0xff]  ;;  %v777_v4 = vsub.f32 %v253_v1, %v1730_v8 }
  0x8f   :  { %1264 = vst [vmem:[#allocation7 + $0x5f0] sm:$0xff] %v752_v16  ;;  %1265 = vst [vmem:[#allocation7 + $0x5f8] sm:$0xff] %v753_v20  ;;  %v778_v5 = vsub.f32 %v254_v2, %v1728_v7  ;;  %v779_v6 = vsub.f32 %v255_v3, %v1730_v8  ;;  %v256_v9 = vld [vmem:[#allocation2 + $0x6d0] sm:$0xff]  ;;  %v257_v10 = vld [vmem:[#allocation2 + $0x6d8] sm:$0xff] }
  0x90   :  { %1266 = vst [vmem:[#allocation7 + $0x600] sm:$0xff] %v754_v21  ;;  %1267 = vst [vmem:[#allocation7 + $0x608] sm:$0xff] %v755_v22  ;;  %v258_v11 = vld [vmem:[#allocation2 + $0x6e0] sm:$0xff]  ;;  %v780_v12 = vsub.f32 %v256_v9, %v1728_v7  ;;  %v781_v13 = vsub.f32 %v257_v10, %v1730_v8  ;;  %v259_v15 = vld [vmem:[#allocation2 + $0x6e8] sm:$0xff] }
  0x91   :  { %1268 = vst [vmem:[#allocation7 + $0x610] sm:$0xff] %v756_v26  ;;  %1269 = vst [vmem:[#allocation7 + $0x618] sm:$0xff] %v757_v27  ;;  %v782_v14 = vsub.f32 %v258_v11, %v1728_v7  ;;  %v260_v16 = vld [vmem:[#allocation2 + $0x6f0] sm:$0xff]  ;;  %v261_v17 = vld [vmem:[#allocation2 + $0x6f8] sm:$0xff]  ;;  %v783_v18 = vsub.f32 %v259_v15, %v1730_v8 }
  0x92   :  { %1270 = vst [vmem:[#allocation7 + $0x620] sm:$0xff] %v758_v28  ;;  %1271 = vst [vmem:[#allocation7 + $0x628] sm:$0xff] %v759_v32  ;;  %v784_v19 = vsub.f32 %v260_v16, %v1728_v7  ;;  %v785_v20 = vsub.f32 %v261_v17, %v1730_v8  ;;  %v262_v21 = vld [vmem:[#allocation2 + $0x700] sm:$0xff]  ;;  %v263_v22 = vld [vmem:[#allocation2 + $0x708] sm:$0xff] }
  0x93   :  { %1272 = vst [vmem:[#allocation7 + $0x630] sm:$0xff] %v760_v33  ;;  %1273 = vst [vmem:[#allocation7 + $0x638] sm:$0xff] %v761_v34  ;;  %v264_v23 = vld [vmem:[#allocation2 + $0x710] sm:$0xff]  ;;  %v786_v24 = vsub.f32 %v262_v21, %v1728_v7  ;;  %v787_v25 = vsub.f32 %v263_v22, %v1730_v8  ;;  %v265_v27 = vld [vmem:[#allocation2 + $0x718] sm:$0xff] }
  0x94   :  { %1274 = vst [vmem:[#allocation7 + $0x640] sm:$0xff] %v762_v38  ;;  %1275 = vst [vmem:[#allocation7 + $0x648] sm:$0xff] %v763_v39  ;;  %v788_v26 = vsub.f32 %v264_v23, %v1728_v7  ;;  %v266_v28 = vld [vmem:[#allocation2 + $0x720] sm:$0xff]  ;;  %v267_v29 = vld [vmem:[#allocation2 + $0x728] sm:$0xff]  ;;  %v789_v30 = vsub.f32 %v265_v27, %v1730_v8 }
  0x95   :  { %1276 = vst [vmem:[#allocation7 + $0x650] sm:$0xff] %v764_v40  ;;  %1277 = vst [vmem:[#allocation7 + $0x658] sm:$0xff] %v765_v44  ;;  %v790_v31 = vsub.f32 %v266_v28, %v1728_v7  ;;  %v791_v32 = vsub.f32 %v267_v29, %v1730_v8  ;;  %v268_v33 = vld [vmem:[#allocation2 + $0x730] sm:$0xff]  ;;  %v269_v34 = vld [vmem:[#allocation2 + $0x738] sm:$0xff] }
  0x96   :  { %1278 = vst [vmem:[#allocation7 + $0x660] sm:$0xff] %v766_v45  ;;  %1279 = vst [vmem:[#allocation7 + $0x668] sm:$0xff] %v767_v46  ;;  %v270_v35 = vld [vmem:[#allocation2 + $0x740] sm:$0xff]  ;;  %v792_v36 = vsub.f32 %v268_v33, %v1728_v7  ;;  %v793_v37 = vsub.f32 %v269_v34, %v1730_v8  ;;  %v271_v39 = vld [vmem:[#allocation2 + $0x748] sm:$0xff] }
  0x97   :  { %1280 = vst [vmem:[#allocation7 + $0x670] sm:$0xff] %v768_v50  ;;  %1281 = vst [vmem:[#allocation7 + $0x678] sm:$0xff] %v769_v51  ;;  %v794_v38 = vsub.f32 %v270_v35, %v1728_v7  ;;  %v272_v40 = vld [vmem:[#allocation2 + $0x750] sm:$0xff]  ;;  %v273_v41 = vld [vmem:[#allocation2 + $0x758] sm:$0xff]  ;;  %v795_v42 = vsub.f32 %v271_v39, %v1730_v8 }
  0x98   :  { %1282 = vst [vmem:[#allocation7 + $0x680] sm:$0xff] %v770_v52  ;;  %1283 = vst [vmem:[#allocation7 + $0x688] sm:$0xff] %v771_v56  ;;  %v796_v43 = vsub.f32 %v272_v40, %v1728_v7  ;;  %v797_v44 = vsub.f32 %v273_v41, %v1730_v8  ;;  %v274_v45 = vld [vmem:[#allocation2 + $0x760] sm:$0xff]  ;;  %v275_v46 = vld [vmem:[#allocation2 + $0x768] sm:$0xff] }
  0x99   :  { %1284 = vst [vmem:[#allocation7 + $0x690] sm:$0xff] %v772_v57  ;;  %1285 = vst [vmem:[#allocation7 + $0x698] sm:$0xff] %v773_v58  ;;  %v276_v47 = vld [vmem:[#allocation2 + $0x770] sm:$0xff]  ;;  %v798_v48 = vsub.f32 %v274_v45, %v1728_v7  ;;  %v799_v49 = vsub.f32 %v275_v46, %v1730_v8  ;;  %v277_v51 = vld [vmem:[#allocation2 + $0x778] sm:$0xff] }
  0x9a   :  { %1286 = vst [vmem:[#allocation7 + $0x6a0] sm:$0xff] %v774_v62  ;;  %1287 = vst [vmem:[#allocation7 + $0x6a8] sm:$0xff] %v775_v63  ;;  %v800_v50 = vsub.f32 %v276_v47, %v1728_v7  ;;  %v278_v52 = vld [vmem:[#allocation2 + $0x780] sm:$0xff]  ;;  %v279_v53 = vld [vmem:[#allocation2 + $0x788] sm:$0xff]  ;;  %v801_v54 = vsub.f32 %v277_v51, %v1730_v8 }
  0x9b   :  { %1288 = vst [vmem:[#allocation7 + $0x6b0] sm:$0xff] %v776_v0  ;;  %1289 = vst [vmem:[#allocation7 + $0x6b8] sm:$0xff] %v777_v4  ;;  %v802_v55 = vsub.f32 %v278_v52, %v1728_v7  ;;  %v803_v56 = vsub.f32 %v279_v53, %v1730_v8  ;;  %v280_v57 = vld [vmem:[#allocation2 + $0x790] sm:$0xff]  ;;  %v281_v58 = vld [vmem:[#allocation2 + $0x798] sm:$0xff] }
  0x9c   :  { %1290 = vst [vmem:[#allocation7 + $0x6c0] sm:$0xff] %v778_v5  ;;  %1291 = vst [vmem:[#allocation7 + $0x6c8] sm:$0xff] %v779_v6  ;;  %v282_v59 = vld [vmem:[#allocation2 + $0x7a0] sm:$0xff]  ;;  %v804_v60 = vsub.f32 %v280_v57, %v1728_v7  ;;  %v805_v61 = vsub.f32 %v281_v58, %v1730_v8  ;;  %v283_v63 = vld [vmem:[#allocation2 + $0x7a8] sm:$0xff] }
  0x9d   :  { %1292 = vst [vmem:[#allocation7 + $0x6d0] sm:$0xff] %v780_v12  ;;  %1293 = vst [vmem:[#allocation7 + $0x6d8] sm:$0xff] %v781_v13  ;;  %v806_v62 = vsub.f32 %v282_v59, %v1728_v7  ;;  %v284_v0 = vld [vmem:[#allocation2 + $0x7b0] sm:$0xff]  ;;  %v285_v1 = vld [vmem:[#allocation2 + $0x7b8] sm:$0xff]  ;;  %v807_v2 = vsub.f32 %v283_v63, %v1730_v8 }
  0x9e   :  { %1294 = vst [vmem:[#allocation7 + $0x6e0] sm:$0xff] %v782_v14  ;;  %1295 = vst [vmem:[#allocation7 + $0x6e8] sm:$0xff] %v783_v18  ;;  %v808_v3 = vsub.f32 %v284_v0, %v1728_v7  ;;  %v809_v4 = vsub.f32 %v285_v1, %v1730_v8  ;;  %v286_v5 = vld [vmem:[#allocation2 + $0x7c0] sm:$0xff]  ;;  %v287_v6 = vld [vmem:[#allocation2 + $0x7c8] sm:$0xff] }
  0x9f   :  { %1296 = vst [vmem:[#allocation7 + $0x6f0] sm:$0xff] %v784_v19  ;;  %1297 = vst [vmem:[#allocation7 + $0x6f8] sm:$0xff] %v785_v20  ;;  %v288_v9 = vld [vmem:[#allocation2 + $0x7d0] sm:$0xff]  ;;  %v810_v10 = vsub.f32 %v286_v5, %v1728_v7  ;;  %v811_v11 = vsub.f32 %v287_v6, %v1730_v8  ;;  %v289_v13 = vld [vmem:[#allocation2 + $0x7d8] sm:$0xff] }
  0xa0   :  { %1298 = vst [vmem:[#allocation7 + $0x700] sm:$0xff] %v786_v24  ;;  %1299 = vst [vmem:[#allocation7 + $0x708] sm:$0xff] %v787_v25  ;;  %v812_v12 = vsub.f32 %v288_v9, %v1728_v7  ;;  %v290_v14 = vld [vmem:[#allocation2 + $0x7e0] sm:$0xff]  ;;  %v291_v15 = vld [vmem:[#allocation2 + $0x7e8] sm:$0xff]  ;;  %v813_v16 = vsub.f32 %v289_v13, %v1730_v8 }
  0xa1   :  { %1300 = vst [vmem:[#allocation7 + $0x710] sm:$0xff] %v788_v26  ;;  %1301 = vst [vmem:[#allocation7 + $0x718] sm:$0xff] %v789_v30  ;;  %v814_v17 = vsub.f32 %v290_v14, %v1728_v7  ;;  %v815_v18 = vsub.f32 %v291_v15, %v1730_v8  ;;  %v292_v19 = vld [vmem:[#allocation2 + $0x7f0] sm:$0xff]  ;;  %v293_v20 = vld [vmem:[#allocation2 + $0x7f8] sm:$0xff] }
  0xa2   :  { %1302 = vst [vmem:[#allocation7 + $0x720] sm:$0xff] %v790_v31  ;;  %1303 = vst [vmem:[#allocation7 + $0x728] sm:$0xff] %v791_v32  ;;  %v294_v21 = vld [vmem:[#allocation2 + $0x800] sm:$0xff]  ;;  %v816_v22 = vsub.f32 %v292_v19, %v1728_v7  ;;  %v817_v23 = vsub.f32 %v293_v20, %v1730_v8  ;;  %v295_v25 = vld [vmem:[#allocation2 + $0x808] sm:$0xff] }
  0xa3   :  { %1304 = vst [vmem:[#allocation7 + $0x730] sm:$0xff] %v792_v36  ;;  %1305 = vst [vmem:[#allocation7 + $0x738] sm:$0xff] %v793_v37  ;;  %v818_v24 = vsub.f32 %v294_v21, %v1728_v7  ;;  %v296_v26 = vld [vmem:[#allocation2 + $0x810] sm:$0xff]  ;;  %v297_v27 = vld [vmem:[#allocation2 + $0x818] sm:$0xff]  ;;  %v819_v28 = vsub.f32 %v295_v25, %v1730_v8 }
  0xa4   :  { %1306 = vst [vmem:[#allocation7 + $0x740] sm:$0xff] %v794_v38  ;;  %1307 = vst [vmem:[#allocation7 + $0x748] sm:$0xff] %v795_v42  ;;  %v820_v29 = vsub.f32 %v296_v26, %v1728_v7  ;;  %v821_v30 = vsub.f32 %v297_v27, %v1730_v8  ;;  %v298_v31 = vld [vmem:[#allocation2 + $0x820] sm:$0xff]  ;;  %v299_v32 = vld [vmem:[#allocation2 + $0x828] sm:$0xff] }
  0xa5   :  { %1308 = vst [vmem:[#allocation7 + $0x750] sm:$0xff] %v796_v43  ;;  %1309 = vst [vmem:[#allocation7 + $0x758] sm:$0xff] %v797_v44  ;;  %v300_v33 = vld [vmem:[#allocation2 + $0x830] sm:$0xff]  ;;  %v822_v34 = vsub.f32 %v298_v31, %v1728_v7  ;;  %v823_v35 = vsub.f32 %v299_v32, %v1730_v8  ;;  %v301_v37 = vld [vmem:[#allocation2 + $0x838] sm:$0xff] }
  0xa6   :  { %1310 = vst [vmem:[#allocation7 + $0x760] sm:$0xff] %v798_v48  ;;  %1311 = vst [vmem:[#allocation7 + $0x768] sm:$0xff] %v799_v49  ;;  %v824_v36 = vsub.f32 %v300_v33, %v1728_v7  ;;  %v302_v38 = vld [vmem:[#allocation2 + $0x840] sm:$0xff]  ;;  %v303_v39 = vld [vmem:[#allocation2 + $0x848] sm:$0xff]  ;;  %v825_v40 = vsub.f32 %v301_v37, %v1730_v8 }
  0xa7   :  { %1312 = vst [vmem:[#allocation7 + $0x770] sm:$0xff] %v800_v50  ;;  %1313 = vst [vmem:[#allocation7 + $0x778] sm:$0xff] %v801_v54  ;;  %v826_v41 = vsub.f32 %v302_v38, %v1728_v7  ;;  %v827_v42 = vsub.f32 %v303_v39, %v1730_v8  ;;  %v304_v43 = vld [vmem:[#allocation2 + $0x850] sm:$0xff]  ;;  %v305_v44 = vld [vmem:[#allocation2 + $0x858] sm:$0xff] }
  0xa8   :  { %1314 = vst [vmem:[#allocation7 + $0x780] sm:$0xff] %v802_v55  ;;  %1315 = vst [vmem:[#allocation7 + $0x788] sm:$0xff] %v803_v56  ;;  %v306_v45 = vld [vmem:[#allocation2 + $0x860] sm:$0xff]  ;;  %v828_v46 = vsub.f32 %v304_v43, %v1728_v7  ;;  %v829_v47 = vsub.f32 %v305_v44, %v1730_v8  ;;  %v307_v49 = vld [vmem:[#allocation2 + $0x868] sm:$0xff] }
  0xa9   :  { %1316 = vst [vmem:[#allocation7 + $0x790] sm:$0xff] %v804_v60  ;;  %1317 = vst [vmem:[#allocation7 + $0x798] sm:$0xff] %v805_v61  ;;  %v830_v48 = vsub.f32 %v306_v45, %v1728_v7  ;;  %v308_v50 = vld [vmem:[#allocation2 + $0x870] sm:$0xff]  ;;  %v309_v51 = vld [vmem:[#allocation2 + $0x878] sm:$0xff]  ;;  %v831_v52 = vsub.f32 %v307_v49, %v1730_v8 }
  0xaa   :  { %1318 = vst [vmem:[#allocation7 + $0x7a0] sm:$0xff] %v806_v62  ;;  %1319 = vst [vmem:[#allocation7 + $0x7a8] sm:$0xff] %v807_v2  ;;  %v832_v53 = vsub.f32 %v308_v50, %v1728_v7  ;;  %v833_v54 = vsub.f32 %v309_v51, %v1730_v8  ;;  %v310_v55 = vld [vmem:[#allocation2 + $0x880] sm:$0xff]  ;;  %v311_v56 = vld [vmem:[#allocation2 + $0x888] sm:$0xff] }
  0xab   :  { %1320 = vst [vmem:[#allocation7 + $0x7b0] sm:$0xff] %v808_v3  ;;  %1321 = vst [vmem:[#allocation7 + $0x7b8] sm:$0xff] %v809_v4  ;;  %v312_v57 = vld [vmem:[#allocation2 + $0x890] sm:$0xff]  ;;  %v834_v58 = vsub.f32 %v310_v55, %v1728_v7  ;;  %v835_v59 = vsub.f32 %v311_v56, %v1730_v8  ;;  %v313_v61 = vld [vmem:[#allocation2 + $0x898] sm:$0xff] }
  0xac   :  { %1322 = vst [vmem:[#allocation7 + $0x7c0] sm:$0xff] %v810_v10  ;;  %1323 = vst [vmem:[#allocation7 + $0x7c8] sm:$0xff] %v811_v11  ;;  %v836_v60 = vsub.f32 %v312_v57, %v1728_v7  ;;  %v314_v62 = vld [vmem:[#allocation2 + $0x8a0] sm:$0xff]  ;;  %v315_v63 = vld [vmem:[#allocation2 + $0x8a8] sm:$0xff]  ;;  %v837_v0 = vsub.f32 %v313_v61, %v1730_v8 }
  0xad   :  { %1324 = vst [vmem:[#allocation7 + $0x7d0] sm:$0xff] %v812_v12  ;;  %1325 = vst [vmem:[#allocation7 + $0x7d8] sm:$0xff] %v813_v16  ;;  %v838_v1 = vsub.f32 %v314_v62, %v1728_v7  ;;  %v839_v2 = vsub.f32 %v315_v63, %v1730_v8  ;;  %v316_v3 = vld [vmem:[#allocation2 + $0x8b0] sm:$0xff]  ;;  %v317_v4 = vld [vmem:[#allocation2 + $0x8b8] sm:$0xff] }
  0xae   :  { %1326 = vst [vmem:[#allocation7 + $0x7e0] sm:$0xff] %v814_v17  ;;  %1327 = vst [vmem:[#allocation7 + $0x7e8] sm:$0xff] %v815_v18  ;;  %v318_v5 = vld [vmem:[#allocation2 + $0x8c0] sm:$0xff]  ;;  %v840_v6 = vsub.f32 %v316_v3, %v1728_v7  ;;  %v841_v9 = vsub.f32 %v317_v4, %v1730_v8  ;;  %v319_v11 = vld [vmem:[#allocation2 + $0x8c8] sm:$0xff] }
  0xaf   :  { %1328 = vst [vmem:[#allocation7 + $0x7f0] sm:$0xff] %v816_v22  ;;  %1329 = vst [vmem:[#allocation7 + $0x7f8] sm:$0xff] %v817_v23  ;;  %v842_v10 = vsub.f32 %v318_v5, %v1728_v7  ;;  %v320_v12 = vld [vmem:[#allocation2 + $0x8d0] sm:$0xff]  ;;  %v321_v13 = vld [vmem:[#allocation2 + $0x8d8] sm:$0xff]  ;;  %v843_v14 = vsub.f32 %v319_v11, %v1730_v8 }
  0xb0   :  { %1330 = vst [vmem:[#allocation7 + $0x800] sm:$0xff] %v818_v24  ;;  %1331 = vst [vmem:[#allocation7 + $0x808] sm:$0xff] %v819_v28  ;;  %v844_v15 = vsub.f32 %v320_v12, %v1728_v7  ;;  %v845_v16 = vsub.f32 %v321_v13, %v1730_v8  ;;  %v322_v17 = vld [vmem:[#allocation2 + $0x8e0] sm:$0xff]  ;;  %v323_v18 = vld [vmem:[#allocation2 + $0x8e8] sm:$0xff] }
  0xb1   :  { %1332 = vst [vmem:[#allocation7 + $0x810] sm:$0xff] %v820_v29  ;;  %1333 = vst [vmem:[#allocation7 + $0x818] sm:$0xff] %v821_v30  ;;  %v324_v19 = vld [vmem:[#allocation2 + $0x8f0] sm:$0xff]  ;;  %v846_v20 = vsub.f32 %v322_v17, %v1728_v7  ;;  %v847_v21 = vsub.f32 %v323_v18, %v1730_v8  ;;  %v325_v23 = vld [vmem:[#allocation2 + $0x8f8] sm:$0xff] }
  0xb2   :  { %1334 = vst [vmem:[#allocation7 + $0x820] sm:$0xff] %v822_v34  ;;  %1335 = vst [vmem:[#allocation7 + $0x828] sm:$0xff] %v823_v35  ;;  %v848_v22 = vsub.f32 %v324_v19, %v1728_v7  ;;  %v326_v24 = vld [vmem:[#allocation2 + $0x900] sm:$0xff]  ;;  %v327_v25 = vld [vmem:[#allocation2 + $0x908] sm:$0xff]  ;;  %v849_v26 = vsub.f32 %v325_v23, %v1730_v8 }
  0xb3   :  { %1336 = vst [vmem:[#allocation7 + $0x830] sm:$0xff] %v824_v36  ;;  %1337 = vst [vmem:[#allocation7 + $0x838] sm:$0xff] %v825_v40  ;;  %v850_v27 = vsub.f32 %v326_v24, %v1728_v7  ;;  %v851_v28 = vsub.f32 %v327_v25, %v1730_v8  ;;  %v328_v29 = vld [vmem:[#allocation2 + $0x910] sm:$0xff]  ;;  %v329_v30 = vld [vmem:[#allocation2 + $0x918] sm:$0xff] }
  0xb4   :  { %1338 = vst [vmem:[#allocation7 + $0x840] sm:$0xff] %v826_v41  ;;  %1339 = vst [vmem:[#allocation7 + $0x848] sm:$0xff] %v827_v42  ;;  %v330_v31 = vld [vmem:[#allocation2 + $0x920] sm:$0xff]  ;;  %v852_v32 = vsub.f32 %v328_v29, %v1728_v7  ;;  %v853_v33 = vsub.f32 %v329_v30, %v1730_v8  ;;  %v331_v35 = vld [vmem:[#allocation2 + $0x928] sm:$0xff] }
  0xb5   :  { %1340 = vst [vmem:[#allocation7 + $0x850] sm:$0xff] %v828_v46  ;;  %1341 = vst [vmem:[#allocation7 + $0x858] sm:$0xff] %v829_v47  ;;  %v854_v34 = vsub.f32 %v330_v31, %v1728_v7  ;;  %v332_v36 = vld [vmem:[#allocation2 + $0x930] sm:$0xff]  ;;  %v333_v37 = vld [vmem:[#allocation2 + $0x938] sm:$0xff]  ;;  %v855_v38 = vsub.f32 %v331_v35, %v1730_v8 }
  0xb6   :  { %1342 = vst [vmem:[#allocation7 + $0x860] sm:$0xff] %v830_v48  ;;  %1343 = vst [vmem:[#allocation7 + $0x868] sm:$0xff] %v831_v52  ;;  %v856_v39 = vsub.f32 %v332_v36, %v1728_v7  ;;  %v857_v40 = vsub.f32 %v333_v37, %v1730_v8  ;;  %v334_v41 = vld [vmem:[#allocation2 + $0x940] sm:$0xff]  ;;  %v335_v42 = vld [vmem:[#allocation2 + $0x948] sm:$0xff] }
  0xb7   :  { %1344 = vst [vmem:[#allocation7 + $0x870] sm:$0xff] %v832_v53  ;;  %1345 = vst [vmem:[#allocation7 + $0x878] sm:$0xff] %v833_v54  ;;  %v336_v43 = vld [vmem:[#allocation2 + $0x950] sm:$0xff]  ;;  %v858_v44 = vsub.f32 %v334_v41, %v1728_v7  ;;  %v859_v45 = vsub.f32 %v335_v42, %v1730_v8  ;;  %v337_v47 = vld [vmem:[#allocation2 + $0x958] sm:$0xff] }
  0xb8   :  { %1346 = vst [vmem:[#allocation7 + $0x880] sm:$0xff] %v834_v58  ;;  %1347 = vst [vmem:[#allocation7 + $0x888] sm:$0xff] %v835_v59  ;;  %v860_v46 = vsub.f32 %v336_v43, %v1728_v7  ;;  %v338_v48 = vld [vmem:[#allocation2 + $0x960] sm:$0xff]  ;;  %v339_v49 = vld [vmem:[#allocation2 + $0x968] sm:$0xff]  ;;  %v861_v50 = vsub.f32 %v337_v47, %v1730_v8 }
  0xb9   :  { %1348 = vst [vmem:[#allocation7 + $0x890] sm:$0xff] %v836_v60  ;;  %1349 = vst [vmem:[#allocation7 + $0x898] sm:$0xff] %v837_v0  ;;  %v862_v51 = vsub.f32 %v338_v48, %v1728_v7  ;;  %v863_v52 = vsub.f32 %v339_v49, %v1730_v8  ;;  %v340_v53 = vld [vmem:[#allocation2 + $0x970] sm:$0xff]  ;;  %v341_v54 = vld [vmem:[#allocation2 + $0x978] sm:$0xff] }
  0xba   :  { %1350 = vst [vmem:[#allocation7 + $0x8a0] sm:$0xff] %v838_v1  ;;  %1351 = vst [vmem:[#allocation7 + $0x8a8] sm:$0xff] %v839_v2  ;;  %v342_v55 = vld [vmem:[#allocation2 + $0x980] sm:$0xff]  ;;  %v864_v56 = vsub.f32 %v340_v53, %v1728_v7  ;;  %v865_v57 = vsub.f32 %v341_v54, %v1730_v8  ;;  %v343_v59 = vld [vmem:[#allocation2 + $0x988] sm:$0xff] }
  0xbb   :  { %1352 = vst [vmem:[#allocation7 + $0x8b0] sm:$0xff] %v840_v6  ;;  %1353 = vst [vmem:[#allocation7 + $0x8b8] sm:$0xff] %v841_v9  ;;  %v866_v58 = vsub.f32 %v342_v55, %v1728_v7  ;;  %v344_v60 = vld [vmem:[#allocation2 + $0x990] sm:$0xff]  ;;  %v345_v61 = vld [vmem:[#allocation2 + $0x998] sm:$0xff]  ;;  %v867_v62 = vsub.f32 %v343_v59, %v1730_v8 }
  0xbc   :  { %1354 = vst [vmem:[#allocation7 + $0x8c0] sm:$0xff] %v842_v10  ;;  %1355 = vst [vmem:[#allocation7 + $0x8c8] sm:$0xff] %v843_v14  ;;  %v868_v63 = vsub.f32 %v344_v60, %v1728_v7  ;;  %v869_v0 = vsub.f32 %v345_v61, %v1730_v8  ;;  %v346_v1 = vld [vmem:[#allocation2 + $0x9a0] sm:$0xff]  ;;  %v347_v2 = vld [vmem:[#allocation2 + $0x9a8] sm:$0xff] }
  0xbd   :  { %1356 = vst [vmem:[#allocation7 + $0x8d0] sm:$0xff] %v844_v15  ;;  %1357 = vst [vmem:[#allocation7 + $0x8d8] sm:$0xff] %v845_v16  ;;  %v348_v3 = vld [vmem:[#allocation2 + $0x9b0] sm:$0xff]  ;;  %v870_v4 = vsub.f32 %v346_v1, %v1728_v7  ;;  %v871_v5 = vsub.f32 %v347_v2, %v1730_v8  ;;  %v349_v9 = vld [vmem:[#allocation2 + $0x9b8] sm:$0xff] }
  0xbe   :  { %1358 = vst [vmem:[#allocation7 + $0x8e0] sm:$0xff] %v846_v20  ;;  %1359 = vst [vmem:[#allocation7 + $0x8e8] sm:$0xff] %v847_v21  ;;  %v872_v6 = vsub.f32 %v348_v3, %v1728_v7  ;;  %v350_v10 = vld [vmem:[#allocation2 + $0x9c0] sm:$0xff]  ;;  %v351_v11 = vld [vmem:[#allocation2 + $0x9c8] sm:$0xff]  ;;  %v873_v12 = vsub.f32 %v349_v9, %v1730_v8 }
  0xbf   :  { %1360 = vst [vmem:[#allocation7 + $0x8f0] sm:$0xff] %v848_v22  ;;  %1361 = vst [vmem:[#allocation7 + $0x8f8] sm:$0xff] %v849_v26  ;;  %v874_v13 = vsub.f32 %v350_v10, %v1728_v7  ;;  %v875_v14 = vsub.f32 %v351_v11, %v1730_v8  ;;  %v352_v15 = vld [vmem:[#allocation2 + $0x9d0] sm:$0xff]  ;;  %v353_v16 = vld [vmem:[#allocation2 + $0x9d8] sm:$0xff] }
  0xc0   :  { %1362 = vst [vmem:[#allocation7 + $0x900] sm:$0xff] %v850_v27  ;;  %1363 = vst [vmem:[#allocation7 + $0x908] sm:$0xff] %v851_v28  ;;  %v354_v17 = vld [vmem:[#allocation2 + $0x9e0] sm:$0xff]  ;;  %v876_v18 = vsub.f32 %v352_v15, %v1728_v7  ;;  %v877_v19 = vsub.f32 %v353_v16, %v1730_v8  ;;  %v355_v21 = vld [vmem:[#allocation2 + $0x9e8] sm:$0xff] }
  0xc1   :  { %1364 = vst [vmem:[#allocation7 + $0x910] sm:$0xff] %v852_v32  ;;  %1365 = vst [vmem:[#allocation7 + $0x918] sm:$0xff] %v853_v33  ;;  %v878_v20 = vsub.f32 %v354_v17, %v1728_v7  ;;  %v356_v22 = vld [vmem:[#allocation2 + $0x9f0] sm:$0xff]  ;;  %v357_v23 = vld [vmem:[#allocation2 + $0x9f8] sm:$0xff]  ;;  %v879_v24 = vsub.f32 %v355_v21, %v1730_v8 }
  0xc2   :  { %1366 = vst [vmem:[#allocation7 + $0x920] sm:$0xff] %v854_v34  ;;  %1367 = vst [vmem:[#allocation7 + $0x928] sm:$0xff] %v855_v38  ;;  %v880_v25 = vsub.f32 %v356_v22, %v1728_v7  ;;  %v881_v26 = vsub.f32 %v357_v23, %v1730_v8  ;;  %v358_v27 = vld [vmem:[#allocation2 + $0xa00] sm:$0xff]  ;;  %v359_v28 = vld [vmem:[#allocation2 + $0xa08] sm:$0xff] }
  0xc3   :  { %1368 = vst [vmem:[#allocation7 + $0x930] sm:$0xff] %v856_v39  ;;  %1369 = vst [vmem:[#allocation7 + $0x938] sm:$0xff] %v857_v40  ;;  %v360_v29 = vld [vmem:[#allocation2 + $0xa10] sm:$0xff]  ;;  %v882_v30 = vsub.f32 %v358_v27, %v1728_v7  ;;  %v883_v31 = vsub.f32 %v359_v28, %v1730_v8  ;;  %v361_v33 = vld [vmem:[#allocation2 + $0xa18] sm:$0xff] }
  0xc4   :  { %1370 = vst [vmem:[#allocation7 + $0x940] sm:$0xff] %v858_v44  ;;  %1371 = vst [vmem:[#allocation7 + $0x948] sm:$0xff] %v859_v45  ;;  %v884_v32 = vsub.f32 %v360_v29, %v1728_v7  ;;  %v362_v34 = vld [vmem:[#allocation2 + $0xa20] sm:$0xff]  ;;  %v363_v35 = vld [vmem:[#allocation2 + $0xa28] sm:$0xff]  ;;  %v885_v36 = vsub.f32 %v361_v33, %v1730_v8 }
  0xc5   :  { %1372 = vst [vmem:[#allocation7 + $0x950] sm:$0xff] %v860_v46  ;;  %1373 = vst [vmem:[#allocation7 + $0x958] sm:$0xff] %v861_v50  ;;  %v886_v37 = vsub.f32 %v362_v34, %v1728_v7  ;;  %v887_v38 = vsub.f32 %v363_v35, %v1730_v8  ;;  %v364_v39 = vld [vmem:[#allocation2 + $0xa30] sm:$0xff]  ;;  %v365_v40 = vld [vmem:[#allocation2 + $0xa38] sm:$0xff] }
  0xc6   :  { %1374 = vst [vmem:[#allocation7 + $0x960] sm:$0xff] %v862_v51  ;;  %1375 = vst [vmem:[#allocation7 + $0x968] sm:$0xff] %v863_v52  ;;  %v366_v41 = vld [vmem:[#allocation2 + $0xa40] sm:$0xff]  ;;  %v888_v42 = vsub.f32 %v364_v39, %v1728_v7  ;;  %v889_v43 = vsub.f32 %v365_v40, %v1730_v8  ;;  %v367_v45 = vld [vmem:[#allocation2 + $0xa48] sm:$0xff] }
  0xc7   :  { %1376 = vst [vmem:[#allocation7 + $0x970] sm:$0xff] %v864_v56  ;;  %1377 = vst [vmem:[#allocation7 + $0x978] sm:$0xff] %v865_v57  ;;  %v890_v44 = vsub.f32 %v366_v41, %v1728_v7  ;;  %v368_v46 = vld [vmem:[#allocation2 + $0xa50] sm:$0xff]  ;;  %v369_v47 = vld [vmem:[#allocation2 + $0xa58] sm:$0xff]  ;;  %v891_v48 = vsub.f32 %v367_v45, %v1730_v8 }
  0xc8   :  { %1378 = vst [vmem:[#allocation7 + $0x980] sm:$0xff] %v866_v58  ;;  %1379 = vst [vmem:[#allocation7 + $0x988] sm:$0xff] %v867_v62  ;;  %v892_v49 = vsub.f32 %v368_v46, %v1728_v7  ;;  %v893_v50 = vsub.f32 %v369_v47, %v1730_v8  ;;  %v370_v51 = vld [vmem:[#allocation2 + $0xa60] sm:$0xff]  ;;  %v371_v52 = vld [vmem:[#allocation2 + $0xa68] sm:$0xff] }
  0xc9   :  { %1380 = vst [vmem:[#allocation7 + $0x990] sm:$0xff] %v868_v63  ;;  %1381 = vst [vmem:[#allocation7 + $0x998] sm:$0xff] %v869_v0  ;;  %v372_v53 = vld [vmem:[#allocation2 + $0xa70] sm:$0xff]  ;;  %v894_v54 = vsub.f32 %v370_v51, %v1728_v7  ;;  %v895_v55 = vsub.f32 %v371_v52, %v1730_v8  ;;  %v373_v57 = vld [vmem:[#allocation2 + $0xa78] sm:$0xff] }
  0xca   :  { %1382 = vst [vmem:[#allocation7 + $0x9a0] sm:$0xff] %v870_v4  ;;  %1383 = vst [vmem:[#allocation7 + $0x9a8] sm:$0xff] %v871_v5  ;;  %v896_v56 = vsub.f32 %v372_v53, %v1728_v7  ;;  %v374_v58 = vld [vmem:[#allocation2 + $0xa80] sm:$0xff]  ;;  %v375_v59 = vld [vmem:[#allocation2 + $0xa88] sm:$0xff]  ;;  %v897_v60 = vsub.f32 %v373_v57, %v1730_v8 }
  0xcb   :  { %1384 = vst [vmem:[#allocation7 + $0x9b0] sm:$0xff] %v872_v6  ;;  %1385 = vst [vmem:[#allocation7 + $0x9b8] sm:$0xff] %v873_v12  ;;  %v898_v61 = vsub.f32 %v374_v58, %v1728_v7  ;;  %v899_v62 = vsub.f32 %v375_v59, %v1730_v8  ;;  %v376_v63 = vld [vmem:[#allocation2 + $0xa90] sm:$0xff]  ;;  %v377_v0 = vld [vmem:[#allocation2 + $0xa98] sm:$0xff] }
  0xcc   :  { %1386 = vst [vmem:[#allocation7 + $0x9c0] sm:$0xff] %v874_v13  ;;  %1387 = vst [vmem:[#allocation7 + $0x9c8] sm:$0xff] %v875_v14  ;;  %v378_v1 = vld [vmem:[#allocation2 + $0xaa0] sm:$0xff]  ;;  %v900_v2 = vsub.f32 %v376_v63, %v1728_v7  ;;  %v901_v3 = vsub.f32 %v377_v0, %v1730_v8  ;;  %v379_v5 = vld [vmem:[#allocation2 + $0xaa8] sm:$0xff] }
  0xcd   :  { %1388 = vst [vmem:[#allocation7 + $0x9d0] sm:$0xff] %v876_v18  ;;  %1389 = vst [vmem:[#allocation7 + $0x9d8] sm:$0xff] %v877_v19  ;;  %v902_v4 = vsub.f32 %v378_v1, %v1728_v7  ;;  %v380_v6 = vld [vmem:[#allocation2 + $0xab0] sm:$0xff]  ;;  %v381_v9 = vld [vmem:[#allocation2 + $0xab8] sm:$0xff]  ;;  %v903_v10 = vsub.f32 %v379_v5, %v1730_v8 }
  0xce   :  { %1390 = vst [vmem:[#allocation7 + $0x9e0] sm:$0xff] %v878_v20  ;;  %1391 = vst [vmem:[#allocation7 + $0x9e8] sm:$0xff] %v879_v24  ;;  %v904_v11 = vsub.f32 %v380_v6, %v1728_v7  ;;  %v905_v12 = vsub.f32 %v381_v9, %v1730_v8  ;;  %v382_v13 = vld [vmem:[#allocation2 + $0xac0] sm:$0xff]  ;;  %v383_v14 = vld [vmem:[#allocation2 + $0xac8] sm:$0xff] }
  0xcf   :  { %1392 = vst [vmem:[#allocation7 + $0x9f0] sm:$0xff] %v880_v25  ;;  %1393 = vst [vmem:[#allocation7 + $0x9f8] sm:$0xff] %v881_v26  ;;  %v384_v15 = vld [vmem:[#allocation2 + $0xad0] sm:$0xff]  ;;  %v906_v16 = vsub.f32 %v382_v13, %v1728_v7  ;;  %v907_v17 = vsub.f32 %v383_v14, %v1730_v8  ;;  %v385_v19 = vld [vmem:[#allocation2 + $0xad8] sm:$0xff] }
  0xd0   :  { %1394 = vst [vmem:[#allocation7 + $0xa00] sm:$0xff] %v882_v30  ;;  %1395 = vst [vmem:[#allocation7 + $0xa08] sm:$0xff] %v883_v31  ;;  %v908_v18 = vsub.f32 %v384_v15, %v1728_v7  ;;  %v386_v20 = vld [vmem:[#allocation2 + $0xae0] sm:$0xff]  ;;  %v387_v21 = vld [vmem:[#allocation2 + $0xae8] sm:$0xff]  ;;  %v909_v22 = vsub.f32 %v385_v19, %v1730_v8 }
  0xd1   :  { %1396 = vst [vmem:[#allocation7 + $0xa10] sm:$0xff] %v884_v32  ;;  %1397 = vst [vmem:[#allocation7 + $0xa18] sm:$0xff] %v885_v36  ;;  %v910_v23 = vsub.f32 %v386_v20, %v1728_v7  ;;  %v911_v24 = vsub.f32 %v387_v21, %v1730_v8  ;;  %v388_v25 = vld [vmem:[#allocation2 + $0xaf0] sm:$0xff]  ;;  %v389_v26 = vld [vmem:[#allocation2 + $0xaf8] sm:$0xff] }
  0xd2   :  { %1398 = vst [vmem:[#allocation7 + $0xa20] sm:$0xff] %v886_v37  ;;  %1399 = vst [vmem:[#allocation7 + $0xa28] sm:$0xff] %v887_v38  ;;  %v390_v27 = vld [vmem:[#allocation2 + $0xb00] sm:$0xff]  ;;  %v912_v28 = vsub.f32 %v388_v25, %v1728_v7  ;;  %v913_v29 = vsub.f32 %v389_v26, %v1730_v8  ;;  %v391_v31 = vld [vmem:[#allocation2 + $0xb08] sm:$0xff] }
  0xd3   :  { %1400 = vst [vmem:[#allocation7 + $0xa30] sm:$0xff] %v888_v42  ;;  %1401 = vst [vmem:[#allocation7 + $0xa38] sm:$0xff] %v889_v43  ;;  %v914_v30 = vsub.f32 %v390_v27, %v1728_v7  ;;  %v392_v32 = vld [vmem:[#allocation2 + $0xb10] sm:$0xff]  ;;  %v393_v33 = vld [vmem:[#allocation2 + $0xb18] sm:$0xff]  ;;  %v915_v34 = vsub.f32 %v391_v31, %v1730_v8 }
  0xd4   :  { %1402 = vst [vmem:[#allocation7 + $0xa40] sm:$0xff] %v890_v44  ;;  %1403 = vst [vmem:[#allocation7 + $0xa48] sm:$0xff] %v891_v48  ;;  %v916_v35 = vsub.f32 %v392_v32, %v1728_v7  ;;  %v917_v36 = vsub.f32 %v393_v33, %v1730_v8  ;;  %v394_v37 = vld [vmem:[#allocation2 + $0xb20] sm:$0xff]  ;;  %v395_v38 = vld [vmem:[#allocation2 + $0xb28] sm:$0xff] }
  0xd5   :  { %1404 = vst [vmem:[#allocation7 + $0xa50] sm:$0xff] %v892_v49  ;;  %1405 = vst [vmem:[#allocation7 + $0xa58] sm:$0xff] %v893_v50  ;;  %v396_v39 = vld [vmem:[#allocation2 + $0xb30] sm:$0xff]  ;;  %v918_v40 = vsub.f32 %v394_v37, %v1728_v7  ;;  %v919_v41 = vsub.f32 %v395_v38, %v1730_v8  ;;  %v397_v43 = vld [vmem:[#allocation2 + $0xb38] sm:$0xff] }
  0xd6   :  { %1406 = vst [vmem:[#allocation7 + $0xa60] sm:$0xff] %v894_v54  ;;  %1407 = vst [vmem:[#allocation7 + $0xa68] sm:$0xff] %v895_v55  ;;  %v920_v42 = vsub.f32 %v396_v39, %v1728_v7  ;;  %v398_v44 = vld [vmem:[#allocation2 + $0xb40] sm:$0xff]  ;;  %v399_v45 = vld [vmem:[#allocation2 + $0xb48] sm:$0xff]  ;;  %v921_v46 = vsub.f32 %v397_v43, %v1730_v8 }
  0xd7   :  { %1408 = vst [vmem:[#allocation7 + $0xa70] sm:$0xff] %v896_v56  ;;  %1409 = vst [vmem:[#allocation7 + $0xa78] sm:$0xff] %v897_v60  ;;  %v922_v47 = vsub.f32 %v398_v44, %v1728_v7  ;;  %v923_v48 = vsub.f32 %v399_v45, %v1730_v8  ;;  %v400_v49 = vld [vmem:[#allocation2 + $0xb50] sm:$0xff]  ;;  %v401_v50 = vld [vmem:[#allocation2 + $0xb58] sm:$0xff] }
  0xd8   :  { %1410 = vst [vmem:[#allocation7 + $0xa80] sm:$0xff] %v898_v61  ;;  %1411 = vst [vmem:[#allocation7 + $0xa88] sm:$0xff] %v899_v62  ;;  %v402_v51 = vld [vmem:[#allocation2 + $0xb60] sm:$0xff]  ;;  %v924_v52 = vsub.f32 %v400_v49, %v1728_v7  ;;  %v925_v53 = vsub.f32 %v401_v50, %v1730_v8  ;;  %v403_v55 = vld [vmem:[#allocation2 + $0xb68] sm:$0xff] }
  0xd9   :  { %1412 = vst [vmem:[#allocation7 + $0xa90] sm:$0xff] %v900_v2  ;;  %1413 = vst [vmem:[#allocation7 + $0xa98] sm:$0xff] %v901_v3  ;;  %v926_v54 = vsub.f32 %v402_v51, %v1728_v7  ;;  %v404_v56 = vld [vmem:[#allocation2 + $0xb70] sm:$0xff]  ;;  %v405_v57 = vld [vmem:[#allocation2 + $0xb78] sm:$0xff]  ;;  %v927_v58 = vsub.f32 %v403_v55, %v1730_v8 }
  0xda   :  { %1414 = vst [vmem:[#allocation7 + $0xaa0] sm:$0xff] %v902_v4  ;;  %1415 = vst [vmem:[#allocation7 + $0xaa8] sm:$0xff] %v903_v10  ;;  %v928_v59 = vsub.f32 %v404_v56, %v1728_v7  ;;  %v929_v60 = vsub.f32 %v405_v57, %v1730_v8  ;;  %v406_v61 = vld [vmem:[#allocation2 + $0xb80] sm:$0xff]  ;;  %v407_v62 = vld [vmem:[#allocation2 + $0xb88] sm:$0xff] }
  0xdb   :  { %1416 = vst [vmem:[#allocation7 + $0xab0] sm:$0xff] %v904_v11  ;;  %1417 = vst [vmem:[#allocation7 + $0xab8] sm:$0xff] %v905_v12  ;;  %v408_v63 = vld [vmem:[#allocation2 + $0xb90] sm:$0xff]  ;;  %v930_v0 = vsub.f32 %v406_v61, %v1728_v7  ;;  %v931_v1 = vsub.f32 %v407_v62, %v1730_v8  ;;  %v409_v3 = vld [vmem:[#allocation2 + $0xb98] sm:$0xff] }
  0xdc   :  { %1418 = vst [vmem:[#allocation7 + $0xac0] sm:$0xff] %v906_v16  ;;  %1419 = vst [vmem:[#allocation7 + $0xac8] sm:$0xff] %v907_v17  ;;  %v932_v2 = vsub.f32 %v408_v63, %v1728_v7  ;;  %v410_v4 = vld [vmem:[#allocation2 + $0xba0] sm:$0xff]  ;;  %v411_v5 = vld [vmem:[#allocation2 + $0xba8] sm:$0xff]  ;;  %v933_v6 = vsub.f32 %v409_v3, %v1730_v8 }
  0xdd   :  { %1420 = vst [vmem:[#allocation7 + $0xad0] sm:$0xff] %v908_v18  ;;  %1421 = vst [vmem:[#allocation7 + $0xad8] sm:$0xff] %v909_v22  ;;  %v934_v9 = vsub.f32 %v410_v4, %v1728_v7  ;;  %v935_v10 = vsub.f32 %v411_v5, %v1730_v8  ;;  %v412_v11 = vld [vmem:[#allocation2 + $0xbb0] sm:$0xff]  ;;  %v413_v12 = vld [vmem:[#allocation2 + $0xbb8] sm:$0xff] }
  0xde   :  { %1422 = vst [vmem:[#allocation7 + $0xae0] sm:$0xff] %v910_v23  ;;  %1423 = vst [vmem:[#allocation7 + $0xae8] sm:$0xff] %v911_v24  ;;  %v414_v13 = vld [vmem:[#allocation2 + $0xbc0] sm:$0xff]  ;;  %v936_v14 = vsub.f32 %v412_v11, %v1728_v7  ;;  %v937_v15 = vsub.f32 %v413_v12, %v1730_v8  ;;  %v415_v17 = vld [vmem:[#allocation2 + $0xbc8] sm:$0xff] }
  0xdf   :  { %1424 = vst [vmem:[#allocation7 + $0xaf0] sm:$0xff] %v912_v28  ;;  %1425 = vst [vmem:[#allocation7 + $0xaf8] sm:$0xff] %v913_v29  ;;  %v938_v16 = vsub.f32 %v414_v13, %v1728_v7  ;;  %v416_v18 = vld [vmem:[#allocation2 + $0xbd0] sm:$0xff]  ;;  %v417_v19 = vld [vmem:[#allocation2 + $0xbd8] sm:$0xff]  ;;  %v939_v20 = vsub.f32 %v415_v17, %v1730_v8 }
  0xe0   :  { %1426 = vst [vmem:[#allocation7 + $0xb00] sm:$0xff] %v914_v30  ;;  %1427 = vst [vmem:[#allocation7 + $0xb08] sm:$0xff] %v915_v34  ;;  %v940_v21 = vsub.f32 %v416_v18, %v1728_v7  ;;  %v941_v22 = vsub.f32 %v417_v19, %v1730_v8  ;;  %v418_v23 = vld [vmem:[#allocation2 + $0xbe0] sm:$0xff]  ;;  %v419_v24 = vld [vmem:[#allocation2 + $0xbe8] sm:$0xff] }
  0xe1   :  { %1428 = vst [vmem:[#allocation7 + $0xb10] sm:$0xff] %v916_v35  ;;  %1429 = vst [vmem:[#allocation7 + $0xb18] sm:$0xff] %v917_v36  ;;  %v420_v25 = vld [vmem:[#allocation2 + $0xbf0] sm:$0xff]  ;;  %v942_v26 = vsub.f32 %v418_v23, %v1728_v7  ;;  %v943_v27 = vsub.f32 %v419_v24, %v1730_v8  ;;  %v421_v29 = vld [vmem:[#allocation2 + $0xbf8] sm:$0xff] }
  0xe2   :  { %1430 = vst [vmem:[#allocation7 + $0xb20] sm:$0xff] %v918_v40  ;;  %1431 = vst [vmem:[#allocation7 + $0xb28] sm:$0xff] %v919_v41  ;;  %v944_v28 = vsub.f32 %v420_v25, %v1728_v7  ;;  %v422_v30 = vld [vmem:[#allocation2 + $0xc00] sm:$0xff]  ;;  %v423_v31 = vld [vmem:[#allocation2 + $0xc08] sm:$0xff]  ;;  %v945_v32 = vsub.f32 %v421_v29, %v1730_v8 }
  0xe3   :  { %1432 = vst [vmem:[#allocation7 + $0xb30] sm:$0xff] %v920_v42  ;;  %1433 = vst [vmem:[#allocation7 + $0xb38] sm:$0xff] %v921_v46  ;;  %v946_v33 = vsub.f32 %v422_v30, %v1728_v7  ;;  %v947_v34 = vsub.f32 %v423_v31, %v1730_v8  ;;  %v424_v35 = vld [vmem:[#allocation2 + $0xc10] sm:$0xff]  ;;  %v425_v36 = vld [vmem:[#allocation2 + $0xc18] sm:$0xff] }
  0xe4   :  { %1434 = vst [vmem:[#allocation7 + $0xb40] sm:$0xff] %v922_v47  ;;  %1435 = vst [vmem:[#allocation7 + $0xb48] sm:$0xff] %v923_v48  ;;  %v426_v37 = vld [vmem:[#allocation2 + $0xc20] sm:$0xff]  ;;  %v948_v38 = vsub.f32 %v424_v35, %v1728_v7  ;;  %v949_v39 = vsub.f32 %v425_v36, %v1730_v8  ;;  %v427_v41 = vld [vmem:[#allocation2 + $0xc28] sm:$0xff] }
  0xe5   :  { %1436 = vst [vmem:[#allocation7 + $0xb50] sm:$0xff] %v924_v52  ;;  %1437 = vst [vmem:[#allocation7 + $0xb58] sm:$0xff] %v925_v53  ;;  %v950_v40 = vsub.f32 %v426_v37, %v1728_v7  ;;  %v428_v42 = vld [vmem:[#allocation2 + $0xc30] sm:$0xff]  ;;  %v429_v43 = vld [vmem:[#allocation2 + $0xc38] sm:$0xff]  ;;  %v951_v44 = vsub.f32 %v427_v41, %v1730_v8 }
  0xe6   :  { %1438 = vst [vmem:[#allocation7 + $0xb60] sm:$0xff] %v926_v54  ;;  %1439 = vst [vmem:[#allocation7 + $0xb68] sm:$0xff] %v927_v58  ;;  %v952_v45 = vsub.f32 %v428_v42, %v1728_v7  ;;  %v953_v46 = vsub.f32 %v429_v43, %v1730_v8  ;;  %v430_v47 = vld [vmem:[#allocation2 + $0xc40] sm:$0xff]  ;;  %v431_v48 = vld [vmem:[#allocation2 + $0xc48] sm:$0xff] }
  0xe7   :  { %1440 = vst [vmem:[#allocation7 + $0xb70] sm:$0xff] %v928_v59  ;;  %1441 = vst [vmem:[#allocation7 + $0xb78] sm:$0xff] %v929_v60  ;;  %v432_v49 = vld [vmem:[#allocation2 + $0xc50] sm:$0xff]  ;;  %v954_v50 = vsub.f32 %v430_v47, %v1728_v7  ;;  %v955_v51 = vsub.f32 %v431_v48, %v1730_v8  ;;  %v433_v53 = vld [vmem:[#allocation2 + $0xc58] sm:$0xff] }
  0xe8   :  { %1442 = vst [vmem:[#allocation7 + $0xb80] sm:$0xff] %v930_v0  ;;  %1443 = vst [vmem:[#allocation7 + $0xb88] sm:$0xff] %v931_v1  ;;  %v956_v52 = vsub.f32 %v432_v49, %v1728_v7  ;;  %v434_v54 = vld [vmem:[#allocation2 + $0xc60] sm:$0xff]  ;;  %v435_v55 = vld [vmem:[#allocation2 + $0xc68] sm:$0xff]  ;;  %v957_v56 = vsub.f32 %v433_v53, %v1730_v8 }
  0xe9   :  { %1444 = vst [vmem:[#allocation7 + $0xb90] sm:$0xff] %v932_v2  ;;  %1445 = vst [vmem:[#allocation7 + $0xb98] sm:$0xff] %v933_v6  ;;  %v958_v57 = vsub.f32 %v434_v54, %v1728_v7  ;;  %v959_v58 = vsub.f32 %v435_v55, %v1730_v8  ;;  %v436_v59 = vld [vmem:[#allocation2 + $0xc70] sm:$0xff]  ;;  %v437_v60 = vld [vmem:[#allocation2 + $0xc78] sm:$0xff] }
  0xea   :  { %1446 = vst [vmem:[#allocation7 + $0xba0] sm:$0xff] %v934_v9  ;;  %1447 = vst [vmem:[#allocation7 + $0xba8] sm:$0xff] %v935_v10  ;;  %v438_v61 = vld [vmem:[#allocation2 + $0xc80] sm:$0xff]  ;;  %v960_v62 = vsub.f32 %v436_v59, %v1728_v7  ;;  %v961_v63 = vsub.f32 %v437_v60, %v1730_v8  ;;  %v439_v1 = vld [vmem:[#allocation2 + $0xc88] sm:$0xff] }
  0xeb   :  { %1448 = vst [vmem:[#allocation7 + $0xbb0] sm:$0xff] %v936_v14  ;;  %1449 = vst [vmem:[#allocation7 + $0xbb8] sm:$0xff] %v937_v15  ;;  %v962_v0 = vsub.f32 %v438_v61, %v1728_v7  ;;  %v440_v2 = vld [vmem:[#allocation2 + $0xc90] sm:$0xff]  ;;  %v441_v3 = vld [vmem:[#allocation2 + $0xc98] sm:$0xff]  ;;  %v963_v4 = vsub.f32 %v439_v1, %v1730_v8 }
  0xec   :  { %1450 = vst [vmem:[#allocation7 + $0xbc0] sm:$0xff] %v938_v16  ;;  %1451 = vst [vmem:[#allocation7 + $0xbc8] sm:$0xff] %v939_v20  ;;  %v964_v5 = vsub.f32 %v440_v2, %v1728_v7  ;;  %v965_v6 = vsub.f32 %v441_v3, %v1730_v8  ;;  %v442_v9 = vld [vmem:[#allocation2 + $0xca0] sm:$0xff]  ;;  %v443_v10 = vld [vmem:[#allocation2 + $0xca8] sm:$0xff] }
  0xed   :  { %1452 = vst [vmem:[#allocation7 + $0xbd0] sm:$0xff] %v940_v21  ;;  %1453 = vst [vmem:[#allocation7 + $0xbd8] sm:$0xff] %v941_v22  ;;  %v444_v11 = vld [vmem:[#allocation2 + $0xcb0] sm:$0xff]  ;;  %v966_v12 = vsub.f32 %v442_v9, %v1728_v7  ;;  %v967_v13 = vsub.f32 %v443_v10, %v1730_v8  ;;  %v445_v15 = vld [vmem:[#allocation2 + $0xcb8] sm:$0xff] }
  0xee   :  { %1454 = vst [vmem:[#allocation7 + $0xbe0] sm:$0xff] %v942_v26  ;;  %1455 = vst [vmem:[#allocation7 + $0xbe8] sm:$0xff] %v943_v27  ;;  %v968_v14 = vsub.f32 %v444_v11, %v1728_v7  ;;  %v446_v16 = vld [vmem:[#allocation2 + $0xcc0] sm:$0xff]  ;;  %v447_v17 = vld [vmem:[#allocation2 + $0xcc8] sm:$0xff]  ;;  %v969_v18 = vsub.f32 %v445_v15, %v1730_v8 }
  0xef   :  { %1456 = vst [vmem:[#allocation7 + $0xbf0] sm:$0xff] %v944_v28  ;;  %1457 = vst [vmem:[#allocation7 + $0xbf8] sm:$0xff] %v945_v32  ;;  %v970_v19 = vsub.f32 %v446_v16, %v1728_v7  ;;  %v971_v20 = vsub.f32 %v447_v17, %v1730_v8  ;;  %v448_v21 = vld [vmem:[#allocation2 + $0xcd0] sm:$0xff]  ;;  %v449_v22 = vld [vmem:[#allocation2 + $0xcd8] sm:$0xff] }
  0xf0   :  { %1458 = vst [vmem:[#allocation7 + $0xc00] sm:$0xff] %v946_v33  ;;  %1459 = vst [vmem:[#allocation7 + $0xc08] sm:$0xff] %v947_v34  ;;  %v450_v23 = vld [vmem:[#allocation2 + $0xce0] sm:$0xff]  ;;  %v972_v24 = vsub.f32 %v448_v21, %v1728_v7  ;;  %v973_v25 = vsub.f32 %v449_v22, %v1730_v8  ;;  %v451_v27 = vld [vmem:[#allocation2 + $0xce8] sm:$0xff] }
  0xf1   :  { %1460 = vst [vmem:[#allocation7 + $0xc10] sm:$0xff] %v948_v38  ;;  %1461 = vst [vmem:[#allocation7 + $0xc18] sm:$0xff] %v949_v39  ;;  %v974_v26 = vsub.f32 %v450_v23, %v1728_v7  ;;  %v452_v28 = vld [vmem:[#allocation2 + $0xcf0] sm:$0xff]  ;;  %v453_v29 = vld [vmem:[#allocation2 + $0xcf8] sm:$0xff]  ;;  %v975_v30 = vsub.f32 %v451_v27, %v1730_v8 }
  0xf2   :  { %1462 = vst [vmem:[#allocation7 + $0xc20] sm:$0xff] %v950_v40  ;;  %1463 = vst [vmem:[#allocation7 + $0xc28] sm:$0xff] %v951_v44  ;;  %v976_v31 = vsub.f32 %v452_v28, %v1728_v7  ;;  %v977_v32 = vsub.f32 %v453_v29, %v1730_v8  ;;  %v454_v33 = vld [vmem:[#allocation2 + $0xd00] sm:$0xff]  ;;  %v455_v34 = vld [vmem:[#allocation2 + $0xd08] sm:$0xff] }
  0xf3   :  { %1464 = vst [vmem:[#allocation7 + $0xc30] sm:$0xff] %v952_v45  ;;  %1465 = vst [vmem:[#allocation7 + $0xc38] sm:$0xff] %v953_v46  ;;  %v456_v35 = vld [vmem:[#allocation2 + $0xd10] sm:$0xff]  ;;  %v978_v36 = vsub.f32 %v454_v33, %v1728_v7  ;;  %v979_v37 = vsub.f32 %v455_v34, %v1730_v8  ;;  %v457_v39 = vld [vmem:[#allocation2 + $0xd18] sm:$0xff] }
  0xf4   :  { %1466 = vst [vmem:[#allocation7 + $0xc40] sm:$0xff] %v954_v50  ;;  %1467 = vst [vmem:[#allocation7 + $0xc48] sm:$0xff] %v955_v51  ;;  %v980_v38 = vsub.f32 %v456_v35, %v1728_v7  ;;  %v458_v40 = vld [vmem:[#allocation2 + $0xd20] sm:$0xff]  ;;  %v459_v41 = vld [vmem:[#allocation2 + $0xd28] sm:$0xff]  ;;  %v981_v42 = vsub.f32 %v457_v39, %v1730_v8 }
  0xf5   :  { %1468 = vst [vmem:[#allocation7 + $0xc50] sm:$0xff] %v956_v52  ;;  %1469 = vst [vmem:[#allocation7 + $0xc58] sm:$0xff] %v957_v56  ;;  %v982_v43 = vsub.f32 %v458_v40, %v1728_v7  ;;  %v983_v44 = vsub.f32 %v459_v41, %v1730_v8  ;;  %v460_v45 = vld [vmem:[#allocation2 + $0xd30] sm:$0xff]  ;;  %v461_v46 = vld [vmem:[#allocation2 + $0xd38] sm:$0xff] }
  0xf6   :  { %1470 = vst [vmem:[#allocation7 + $0xc60] sm:$0xff] %v958_v57  ;;  %1471 = vst [vmem:[#allocation7 + $0xc68] sm:$0xff] %v959_v58  ;;  %v462_v47 = vld [vmem:[#allocation2 + $0xd40] sm:$0xff]  ;;  %v984_v48 = vsub.f32 %v460_v45, %v1728_v7  ;;  %v985_v49 = vsub.f32 %v461_v46, %v1730_v8  ;;  %v463_v51 = vld [vmem:[#allocation2 + $0xd48] sm:$0xff] }
  0xf7   :  { %1472 = vst [vmem:[#allocation7 + $0xc70] sm:$0xff] %v960_v62  ;;  %1473 = vst [vmem:[#allocation7 + $0xc78] sm:$0xff] %v961_v63  ;;  %v986_v50 = vsub.f32 %v462_v47, %v1728_v7  ;;  %v464_v52 = vld [vmem:[#allocation2 + $0xd50] sm:$0xff]  ;;  %v465_v53 = vld [vmem:[#allocation2 + $0xd58] sm:$0xff]  ;;  %v987_v54 = vsub.f32 %v463_v51, %v1730_v8 }
  0xf8   :  { %1474 = vst [vmem:[#allocation7 + $0xc80] sm:$0xff] %v962_v0  ;;  %1475 = vst [vmem:[#allocation7 + $0xc88] sm:$0xff] %v963_v4  ;;  %v988_v55 = vsub.f32 %v464_v52, %v1728_v7  ;;  %v989_v56 = vsub.f32 %v465_v53, %v1730_v8  ;;  %v466_v57 = vld [vmem:[#allocation2 + $0xd60] sm:$0xff]  ;;  %v467_v58 = vld [vmem:[#allocation2 + $0xd68] sm:$0xff] }
  0xf9   :  { %1476 = vst [vmem:[#allocation7 + $0xc90] sm:$0xff] %v964_v5  ;;  %1477 = vst [vmem:[#allocation7 + $0xc98] sm:$0xff] %v965_v6  ;;  %v468_v59 = vld [vmem:[#allocation2 + $0xd70] sm:$0xff]  ;;  %v990_v60 = vsub.f32 %v466_v57, %v1728_v7  ;;  %v991_v61 = vsub.f32 %v467_v58, %v1730_v8  ;;  %v469_v63 = vld [vmem:[#allocation2 + $0xd78] sm:$0xff] }
  0xfa   :  { %1478 = vst [vmem:[#allocation7 + $0xca0] sm:$0xff] %v966_v12  ;;  %1479 = vst [vmem:[#allocation7 + $0xca8] sm:$0xff] %v967_v13  ;;  %v992_v62 = vsub.f32 %v468_v59, %v1728_v7  ;;  %v470_v0 = vld [vmem:[#allocation2 + $0xd80] sm:$0xff]  ;;  %v471_v1 = vld [vmem:[#allocation2 + $0xd88] sm:$0xff]  ;;  %v993_v2 = vsub.f32 %v469_v63, %v1730_v8 }
  0xfb   :  { %1480 = vst [vmem:[#allocation7 + $0xcb0] sm:$0xff] %v968_v14  ;;  %1481 = vst [vmem:[#allocation7 + $0xcb8] sm:$0xff] %v969_v18  ;;  %v994_v3 = vsub.f32 %v470_v0, %v1728_v7  ;;  %v995_v4 = vsub.f32 %v471_v1, %v1730_v8  ;;  %v472_v5 = vld [vmem:[#allocation2 + $0xd90] sm:$0xff]  ;;  %v473_v6 = vld [vmem:[#allocation2 + $0xd98] sm:$0xff] }
  0xfc   :  { %1482 = vst [vmem:[#allocation7 + $0xcc0] sm:$0xff] %v970_v19  ;;  %1483 = vst [vmem:[#allocation7 + $0xcc8] sm:$0xff] %v971_v20  ;;  %v474_v9 = vld [vmem:[#allocation2 + $0xda0] sm:$0xff]  ;;  %v996_v10 = vsub.f32 %v472_v5, %v1728_v7  ;;  %v997_v11 = vsub.f32 %v473_v6, %v1730_v8  ;;  %v475_v13 = vld [vmem:[#allocation2 + $0xda8] sm:$0xff] }
  0xfd   :  { %1484 = vst [vmem:[#allocation7 + $0xcd0] sm:$0xff] %v972_v24  ;;  %1485 = vst [vmem:[#allocation7 + $0xcd8] sm:$0xff] %v973_v25  ;;  %v998_v12 = vsub.f32 %v474_v9, %v1728_v7  ;;  %v476_v14 = vld [vmem:[#allocation2 + $0xdb0] sm:$0xff]  ;;  %v477_v15 = vld [vmem:[#allocation2 + $0xdb8] sm:$0xff]  ;;  %v999_v16 = vsub.f32 %v475_v13, %v1730_v8 }
  0xfe   :  { %1486 = vst [vmem:[#allocation7 + $0xce0] sm:$0xff] %v974_v26  ;;  %1487 = vst [vmem:[#allocation7 + $0xce8] sm:$0xff] %v975_v30  ;;  %v1000_v17 = vsub.f32 %v476_v14, %v1728_v7  ;;  %v1001_v18 = vsub.f32 %v477_v15, %v1730_v8  ;;  %v478_v19 = vld [vmem:[#allocation2 + $0xdc0] sm:$0xff]  ;;  %v479_v20 = vld [vmem:[#allocation2 + $0xdc8] sm:$0xff] }
  0xff   :  { %1488 = vst [vmem:[#allocation7 + $0xcf0] sm:$0xff] %v976_v31  ;;  %1489 = vst [vmem:[#allocation7 + $0xcf8] sm:$0xff] %v977_v32  ;;  %v480_v21 = vld [vmem:[#allocation2 + $0xdd0] sm:$0xff]  ;;  %v1002_v22 = vsub.f32 %v478_v19, %v1728_v7  ;;  %v1003_v23 = vsub.f32 %v479_v20, %v1730_v8  ;;  %v481_v25 = vld [vmem:[#allocation2 + $0xdd8] sm:$0xff] }
 0x100   :  { %1490 = vst [vmem:[#allocation7 + $0xd00] sm:$0xff] %v978_v36  ;;  %1491 = vst [vmem:[#allocation7 + $0xd08] sm:$0xff] %v979_v37  ;;  %v1004_v24 = vsub.f32 %v480_v21, %v1728_v7  ;;  %v482_v26 = vld [vmem:[#allocation2 + $0xde0] sm:$0xff]  ;;  %v483_v27 = vld [vmem:[#allocation2 + $0xde8] sm:$0xff]  ;;  %v1005_v28 = vsub.f32 %v481_v25, %v1730_v8 }
 0x101   :  { %1492 = vst [vmem:[#allocation7 + $0xd10] sm:$0xff] %v980_v38  ;;  %1493 = vst [vmem:[#allocation7 + $0xd18] sm:$0xff] %v981_v42  ;;  %v1006_v29 = vsub.f32 %v482_v26, %v1728_v7  ;;  %v1007_v30 = vsub.f32 %v483_v27, %v1730_v8  ;;  %v484_v31 = vld [vmem:[#allocation2 + $0xdf0] sm:$0xff]  ;;  %v485_v32 = vld [vmem:[#allocation2 + $0xdf8] sm:$0xff] }
 0x102   :  { %1494 = vst [vmem:[#allocation7 + $0xd20] sm:$0xff] %v982_v43  ;;  %1495 = vst [vmem:[#allocation7 + $0xd28] sm:$0xff] %v983_v44  ;;  %v486_v33 = vld [vmem:[#allocation2 + $0xe00] sm:$0xff]  ;;  %v1008_v34 = vsub.f32 %v484_v31, %v1728_v7  ;;  %v1009_v35 = vsub.f32 %v485_v32, %v1730_v8  ;;  %v487_v37 = vld [vmem:[#allocation2 + $0xe08] sm:$0xff] }
 0x103   :  { %1496 = vst [vmem:[#allocation7 + $0xd30] sm:$0xff] %v984_v48  ;;  %1497 = vst [vmem:[#allocation7 + $0xd38] sm:$0xff] %v985_v49  ;;  %v1010_v36 = vsub.f32 %v486_v33, %v1728_v7  ;;  %v488_v38 = vld [vmem:[#allocation2 + $0xe10] sm:$0xff]  ;;  %v489_v39 = vld [vmem:[#allocation2 + $0xe18] sm:$0xff]  ;;  %v1011_v40 = vsub.f32 %v487_v37, %v1730_v8 }
 0x104   :  { %1498 = vst [vmem:[#allocation7 + $0xd40] sm:$0xff] %v986_v50  ;;  %1499 = vst [vmem:[#allocation7 + $0xd48] sm:$0xff] %v987_v54  ;;  %v1012_v41 = vsub.f32 %v488_v38, %v1728_v7  ;;  %v1013_v42 = vsub.f32 %v489_v39, %v1730_v8  ;;  %v490_v43 = vld [vmem:[#allocation2 + $0xe20] sm:$0xff]  ;;  %v491_v44 = vld [vmem:[#allocation2 + $0xe28] sm:$0xff] }
 0x105   :  { %1500 = vst [vmem:[#allocation7 + $0xd50] sm:$0xff] %v988_v55  ;;  %1501 = vst [vmem:[#allocation7 + $0xd58] sm:$0xff] %v989_v56  ;;  %v492_v45 = vld [vmem:[#allocation2 + $0xe30] sm:$0xff]  ;;  %v1014_v46 = vsub.f32 %v490_v43, %v1728_v7  ;;  %v1015_v47 = vsub.f32 %v491_v44, %v1730_v8  ;;  %v493_v49 = vld [vmem:[#allocation2 + $0xe38] sm:$0xff] }
 0x106   :  { %1502 = vst [vmem:[#allocation7 + $0xd60] sm:$0xff] %v990_v60  ;;  %1503 = vst [vmem:[#allocation7 + $0xd68] sm:$0xff] %v991_v61  ;;  %v1016_v48 = vsub.f32 %v492_v45, %v1728_v7  ;;  %v494_v50 = vld [vmem:[#allocation2 + $0xe40] sm:$0xff]  ;;  %v495_v51 = vld [vmem:[#allocation2 + $0xe48] sm:$0xff]  ;;  %v1017_v52 = vsub.f32 %v493_v49, %v1730_v8 }
 0x107   :  { %1504 = vst [vmem:[#allocation7 + $0xd70] sm:$0xff] %v992_v62  ;;  %1505 = vst [vmem:[#allocation7 + $0xd78] sm:$0xff] %v993_v2  ;;  %v1018_v53 = vsub.f32 %v494_v50, %v1728_v7  ;;  %v1019_v54 = vsub.f32 %v495_v51, %v1730_v8  ;;  %v496_v55 = vld [vmem:[#allocation2 + $0xe50] sm:$0xff]  ;;  %v497_v56 = vld [vmem:[#allocation2 + $0xe58] sm:$0xff] }
 0x108   :  { %1506 = vst [vmem:[#allocation7 + $0xd80] sm:$0xff] %v994_v3  ;;  %1507 = vst [vmem:[#allocation7 + $0xd88] sm:$0xff] %v995_v4  ;;  %v498_v57 = vld [vmem:[#allocation2 + $0xe60] sm:$0xff]  ;;  %v1020_v58 = vsub.f32 %v496_v55, %v1728_v7  ;;  %v1021_v59 = vsub.f32 %v497_v56, %v1730_v8  ;;  %v499_v61 = vld [vmem:[#allocation2 + $0xe68] sm:$0xff] }
 0x109   :  { %1508 = vst [vmem:[#allocation7 + $0xd90] sm:$0xff] %v996_v10  ;;  %1509 = vst [vmem:[#allocation7 + $0xd98] sm:$0xff] %v997_v11  ;;  %v1022_v60 = vsub.f32 %v498_v57, %v1728_v7  ;;  %v500_v62 = vld [vmem:[#allocation2 + $0xe70] sm:$0xff]  ;;  %v501_v63 = vld [vmem:[#allocation2 + $0xe78] sm:$0xff]  ;;  %v1023_v0 = vsub.f32 %v499_v61, %v1730_v8 }
 0x10a   :  { %1510 = vst [vmem:[#allocation7 + $0xda0] sm:$0xff] %v998_v12  ;;  %1511 = vst [vmem:[#allocation7 + $0xda8] sm:$0xff] %v999_v16  ;;  %v1024_v1 = vsub.f32 %v500_v62, %v1728_v7  ;;  %v1025_v2 = vsub.f32 %v501_v63, %v1730_v8  ;;  %v502_v3 = vld [vmem:[#allocation2 + $0xe80] sm:$0xff]  ;;  %v503_v4 = vld [vmem:[#allocation2 + $0xe88] sm:$0xff] }
 0x10b   :  { %1512 = vst [vmem:[#allocation7 + $0xdb0] sm:$0xff] %v1000_v17  ;;  %1513 = vst [vmem:[#allocation7 + $0xdb8] sm:$0xff] %v1001_v18  ;;  %v504_v5 = vld [vmem:[#allocation2 + $0xe90] sm:$0xff]  ;;  %v1026_v6 = vsub.f32 %v502_v3, %v1728_v7  ;;  %v1027_v9 = vsub.f32 %v503_v4, %v1730_v8  ;;  %v505_v11 = vld [vmem:[#allocation2 + $0xe98] sm:$0xff] }
 0x10c   :  { %1514 = vst [vmem:[#allocation7 + $0xdc0] sm:$0xff] %v1002_v22  ;;  %1515 = vst [vmem:[#allocation7 + $0xdc8] sm:$0xff] %v1003_v23  ;;  %v1028_v10 = vsub.f32 %v504_v5, %v1728_v7  ;;  %v506_v12 = vld [vmem:[#allocation2 + $0xea0] sm:$0xff]  ;;  %v507_v13 = vld [vmem:[#allocation2 + $0xea8] sm:$0xff]  ;;  %v1029_v14 = vsub.f32 %v505_v11, %v1730_v8 }
 0x10d   :  { %1516 = vst [vmem:[#allocation7 + $0xdd0] sm:$0xff] %v1004_v24  ;;  %1517 = vst [vmem:[#allocation7 + $0xdd8] sm:$0xff] %v1005_v28  ;;  %v1030_v15 = vsub.f32 %v506_v12, %v1728_v7  ;;  %v1031_v16 = vsub.f32 %v507_v13, %v1730_v8  ;;  %v508_v17 = vld [vmem:[#allocation2 + $0xeb0] sm:$0xff]  ;;  %v509_v18 = vld [vmem:[#allocation2 + $0xeb8] sm:$0xff] }
 0x10e   :  { %1518 = vst [vmem:[#allocation7 + $0xde0] sm:$0xff] %v1006_v29  ;;  %1519 = vst [vmem:[#allocation7 + $0xde8] sm:$0xff] %v1007_v30  ;;  %v510_v19 = vld [vmem:[#allocation2 + $0xec0] sm:$0xff]  ;;  %v1032_v20 = vsub.f32 %v508_v17, %v1728_v7  ;;  %v1033_v21 = vsub.f32 %v509_v18, %v1730_v8  ;;  %v511_v23 = vld [vmem:[#allocation2 + $0xec8] sm:$0xff] }
 0x10f   :  { %1520 = vst [vmem:[#allocation7 + $0xdf0] sm:$0xff] %v1008_v34  ;;  %1521 = vst [vmem:[#allocation7 + $0xdf8] sm:$0xff] %v1009_v35  ;;  %v1034_v22 = vsub.f32 %v510_v19, %v1728_v7  ;;  %v512_v24 = vld [vmem:[#allocation2 + $0xed0] sm:$0xff]  ;;  %v513_v25 = vld [vmem:[#allocation2 + $0xed8] sm:$0xff]  ;;  %v1035_v26 = vsub.f32 %v511_v23, %v1730_v8 }
 0x110   :  { %1522 = vst [vmem:[#allocation7 + $0xe00] sm:$0xff] %v1010_v36  ;;  %1523 = vst [vmem:[#allocation7 + $0xe08] sm:$0xff] %v1011_v40  ;;  %v1036_v27 = vsub.f32 %v512_v24, %v1728_v7  ;;  %v1037_v28 = vsub.f32 %v513_v25, %v1730_v8  ;;  %v514_v29 = vld [vmem:[#allocation2 + $0xee0] sm:$0xff]  ;;  %v515_v30 = vld [vmem:[#allocation2 + $0xee8] sm:$0xff] }
 0x111   :  { %1524 = vst [vmem:[#allocation7 + $0xe10] sm:$0xff] %v1012_v41  ;;  %1525 = vst [vmem:[#allocation7 + $0xe18] sm:$0xff] %v1013_v42  ;;  %v516_v31 = vld [vmem:[#allocation2 + $0xef0] sm:$0xff]  ;;  %v1038_v32 = vsub.f32 %v514_v29, %v1728_v7  ;;  %v1039_v33 = vsub.f32 %v515_v30, %v1730_v8  ;;  %v517_v35 = vld [vmem:[#allocation2 + $0xef8] sm:$0xff] }
 0x112   :  { %1526 = vst [vmem:[#allocation7 + $0xe20] sm:$0xff] %v1014_v46  ;;  %1527 = vst [vmem:[#allocation7 + $0xe28] sm:$0xff] %v1015_v47  ;;  %v1040_v34 = vsub.f32 %v516_v31, %v1728_v7  ;;  %v518_v36 = vld [vmem:[#allocation2 + $0xf00] sm:$0xff]  ;;  %v519_v37 = vld [vmem:[#allocation2 + $0xf08] sm:$0xff]  ;;  %v1041_v38 = vsub.f32 %v517_v35, %v1730_v8 }
 0x113   :  { %1528 = vst [vmem:[#allocation7 + $0xe30] sm:$0xff] %v1016_v48  ;;  %1529 = vst [vmem:[#allocation7 + $0xe38] sm:$0xff] %v1017_v52  ;;  %v1042_v39 = vsub.f32 %v518_v36, %v1728_v7  ;;  %v1043_v40 = vsub.f32 %v519_v37, %v1730_v8  ;;  %v520_v41 = vld [vmem:[#allocation2 + $0xf10] sm:$0xff]  ;;  %v521_v42 = vld [vmem:[#allocation2 + $0xf18] sm:$0xff] }
 0x114   :  { %1530 = vst [vmem:[#allocation7 + $0xe40] sm:$0xff] %v1018_v53  ;;  %1531 = vst [vmem:[#allocation7 + $0xe48] sm:$0xff] %v1019_v54  ;;  %v522_v43 = vld [vmem:[#allocation2 + $0xf20] sm:$0xff]  ;;  %v1044_v44 = vsub.f32 %v520_v41, %v1728_v7  ;;  %v1045_v45 = vsub.f32 %v521_v42, %v1730_v8  ;;  %v523_v47 = vld [vmem:[#allocation2 + $0xf28] sm:$0xff] }
 0x115   :  { %1532 = vst [vmem:[#allocation7 + $0xe50] sm:$0xff] %v1020_v58  ;;  %1533 = vst [vmem:[#allocation7 + $0xe58] sm:$0xff] %v1021_v59  ;;  %v1046_v46 = vsub.f32 %v522_v43, %v1728_v7  ;;  %v524_v48 = vld [vmem:[#allocation2 + $0xf30] sm:$0xff]  ;;  %v525_v49 = vld [vmem:[#allocation2 + $0xf38] sm:$0xff]  ;;  %v1047_v50 = vsub.f32 %v523_v47, %v1730_v8 }
 0x116   :  { %1534 = vst [vmem:[#allocation7 + $0xe60] sm:$0xff] %v1022_v60  ;;  %1535 = vst [vmem:[#allocation7 + $0xe68] sm:$0xff] %v1023_v0  ;;  %v1048_v51 = vsub.f32 %v524_v48, %v1728_v7  ;;  %v1049_v52 = vsub.f32 %v525_v49, %v1730_v8  ;;  %v526_v53 = vld [vmem:[#allocation2 + $0xf40] sm:$0xff]  ;;  %v527_v54 = vld [vmem:[#allocation2 + $0xf48] sm:$0xff] }
 0x117   :  { %1536 = vst [vmem:[#allocation7 + $0xe70] sm:$0xff] %v1024_v1  ;;  %1537 = vst [vmem:[#allocation7 + $0xe78] sm:$0xff] %v1025_v2  ;;  %v528_v55 = vld [vmem:[#allocation2 + $0xf50] sm:$0xff]  ;;  %v1050_v56 = vsub.f32 %v526_v53, %v1728_v7  ;;  %v1051_v57 = vsub.f32 %v527_v54, %v1730_v8  ;;  %v529_v59 = vld [vmem:[#allocation2 + $0xf58] sm:$0xff] }
 0x118   :  { %1538 = vst [vmem:[#allocation7 + $0xe80] sm:$0xff] %v1026_v6  ;;  %1539 = vst [vmem:[#allocation7 + $0xe88] sm:$0xff] %v1027_v9  ;;  %v1052_v58 = vsub.f32 %v528_v55, %v1728_v7  ;;  %v530_v60 = vld [vmem:[#allocation2 + $0xf60] sm:$0xff]  ;;  %v531_v61 = vld [vmem:[#allocation2 + $0xf68] sm:$0xff]  ;;  %v1053_v62 = vsub.f32 %v529_v59, %v1730_v8 }
 0x119   :  { %1540 = vst [vmem:[#allocation7 + $0xe90] sm:$0xff] %v1028_v10  ;;  %1541 = vst [vmem:[#allocation7 + $0xe98] sm:$0xff] %v1029_v14  ;;  %v1054_v63 = vsub.f32 %v530_v60, %v1728_v7  ;;  %v1055_v0 = vsub.f32 %v531_v61, %v1730_v8  ;;  %v532_v1 = vld [vmem:[#allocation2 + $0xf70] sm:$0xff]  ;;  %v533_v2 = vld [vmem:[#allocation2 + $0xf78] sm:$0xff] }
 0x11a   :  { %1542 = vst [vmem:[#allocation7 + $0xea0] sm:$0xff] %v1030_v15  ;;  %1543 = vst [vmem:[#allocation7 + $0xea8] sm:$0xff] %v1031_v16  ;;  %v534_v3 = vld [vmem:[#allocation2 + $0xf80] sm:$0xff]  ;;  %v1056_v4 = vsub.f32 %v532_v1, %v1728_v7  ;;  %v1057_v5 = vsub.f32 %v533_v2, %v1730_v8  ;;  %v535_v9 = vld [vmem:[#allocation2 + $0xf88] sm:$0xff] }
 0x11b   :  { %1544 = vst [vmem:[#allocation7 + $0xeb0] sm:$0xff] %v1032_v20  ;;  %1545 = vst [vmem:[#allocation7 + $0xeb8] sm:$0xff] %v1033_v21  ;;  %v1058_v6 = vsub.f32 %v534_v3, %v1728_v7  ;;  %v536_v10 = vld [vmem:[#allocation2 + $0xf90] sm:$0xff]  ;;  %v537_v11 = vld [vmem:[#allocation2 + $0xf98] sm:$0xff]  ;;  %v1059_v12 = vsub.f32 %v535_v9, %v1730_v8 }
 0x11c   :  { %1546 = vst [vmem:[#allocation7 + $0xec0] sm:$0xff] %v1034_v22  ;;  %1547 = vst [vmem:[#allocation7 + $0xec8] sm:$0xff] %v1035_v26  ;;  %v1060_v13 = vsub.f32 %v536_v10, %v1728_v7  ;;  %v1061_v14 = vsub.f32 %v537_v11, %v1730_v8  ;;  %v538_v15 = vld [vmem:[#allocation2 + $0xfa0] sm:$0xff]  ;;  %v539_v16 = vld [vmem:[#allocation2 + $0xfa8] sm:$0xff] }
 0x11d   :  { %1548 = vst [vmem:[#allocation7 + $0xed0] sm:$0xff] %v1036_v27  ;;  %1549 = vst [vmem:[#allocation7 + $0xed8] sm:$0xff] %v1037_v28  ;;  %v540_v17 = vld [vmem:[#allocation2 + $0xfb0] sm:$0xff]  ;;  %v1062_v18 = vsub.f32 %v538_v15, %v1728_v7  ;;  %v1063_v19 = vsub.f32 %v539_v16, %v1730_v8  ;;  %v541_v21 = vld [vmem:[#allocation2 + $0xfb8] sm:$0xff] }
 0x11e   :  { %1550 = vst [vmem:[#allocation7 + $0xee0] sm:$0xff] %v1038_v32  ;;  %1551 = vst [vmem:[#allocation7 + $0xee8] sm:$0xff] %v1039_v33  ;;  %v1064_v20 = vsub.f32 %v540_v17, %v1728_v7  ;;  %v542_v22 = vld [vmem:[#allocation2 + $0xfc0] sm:$0xff]  ;;  %v543_v23 = vld [vmem:[#allocation2 + $0xfc8] sm:$0xff]  ;;  %v1065_v24 = vsub.f32 %v541_v21, %v1730_v8 }
 0x11f   :  { %1552 = vst [vmem:[#allocation7 + $0xef0] sm:$0xff] %v1040_v34  ;;  %1553 = vst [vmem:[#allocation7 + $0xef8] sm:$0xff] %v1041_v38  ;;  %v1066_v25 = vsub.f32 %v542_v22, %v1728_v7  ;;  %v1067_v26 = vsub.f32 %v543_v23, %v1730_v8  ;;  %v544_v27 = vld [vmem:[#allocation2 + $0xfd0] sm:$0xff]  ;;  %v545_v28 = vld [vmem:[#allocation2 + $0xfd8] sm:$0xff] }
 0x120   :  { %1554 = vst [vmem:[#allocation7 + $0xf00] sm:$0xff] %v1042_v39  ;;  %1555 = vst [vmem:[#allocation7 + $0xf08] sm:$0xff] %v1043_v40  ;;  %v546_v29 = vld [vmem:[#allocation2 + $0xfe0] sm:$0xff]  ;;  %v1068_v30 = vsub.f32 %v544_v27, %v1728_v7  ;;  %v1069_v31 = vsub.f32 %v545_v28, %v1730_v8  ;;  %v547_v33 = vld [vmem:[#allocation2 + $0xfe8] sm:$0xff] }
 0x121   :  { %1556 = vst [vmem:[#allocation7 + $0xf10] sm:$0xff] %v1044_v44  ;;  %1557 = vst [vmem:[#allocation7 + $0xf18] sm:$0xff] %v1045_v45  ;;  %v1070_v32 = vsub.f32 %v546_v29, %v1728_v7  ;;  %v548_v34 = vld [vmem:[#allocation2 + $0xff0] sm:$0xff]  ;;  %v549_v35 = vld [vmem:[#allocation2 + $0xff8] sm:$0xff]  ;;  %v1071_v36 = vsub.f32 %v547_v33, %v1730_v8 }
 0x122   :  { %1558 = vst [vmem:[#allocation7 + $0xf20] sm:$0xff] %v1046_v46  ;;  %1559 = vst [vmem:[#allocation7 + $0xf28] sm:$0xff] %v1047_v50  ;;  %v1072_v37 = vsub.f32 %v548_v34, %v1728_v7  ;;  %v1073_v38 = vsub.f32 %v549_v35, %v1730_v8 }
 0x123   :  { %1560 = vst [vmem:[#allocation7 + $0xf30] sm:$0xff] %v1048_v51  ;;  %1561 = vst [vmem:[#allocation7 + $0xf38] sm:$0xff] %v1049_v52 }
 0x124   :  { %1562 = vst [vmem:[#allocation7 + $0xf40] sm:$0xff] %v1050_v56  ;;  %1563 = vst [vmem:[#allocation7 + $0xf48] sm:$0xff] %v1051_v57 }
 0x125   :  { %1564 = vst [vmem:[#allocation7 + $0xf50] sm:$0xff] %v1052_v58  ;;  %1565 = vst [vmem:[#allocation7 + $0xf58] sm:$0xff] %v1053_v62 }
 0x126   :  { %1566 = vst [vmem:[#allocation7 + $0xf60] sm:$0xff] %v1054_v63  ;;  %1567 = vst [vmem:[#allocation7 + $0xf68] sm:$0xff] %v1055_v0 }
 0x127   :  { %1568 = vst [vmem:[#allocation7 + $0xf70] sm:$0xff] %v1056_v4  ;;  %1569 = vst [vmem:[#allocation7 + $0xf78] sm:$0xff] %v1057_v5 }
 0x128   :  { %1570 = vst [vmem:[#allocation7 + $0xf80] sm:$0xff] %v1058_v6  ;;  %1571 = vst [vmem:[#allocation7 + $0xf88] sm:$0xff] %v1059_v12 }
 0x129   :  { %1572 = vst [vmem:[#allocation7 + $0xf90] sm:$0xff] %v1060_v13  ;;  %1573 = vst [vmem:[#allocation7 + $0xf98] sm:$0xff] %v1061_v14 }
 0x12a   :  { %1574 = vst [vmem:[#allocation7 + $0xfa0] sm:$0xff] %v1062_v18  ;;  %1575 = vst [vmem:[#allocation7 + $0xfa8] sm:$0xff] %v1063_v19 }
 0x12b   :  { %1576 = vst [vmem:[#allocation7 + $0xfb0] sm:$0xff] %v1064_v20  ;;  %1577 = vst [vmem:[#allocation7 + $0xfb8] sm:$0xff] %v1065_v24 }
 0x12c   :  { %1578 = vst [vmem:[#allocation7 + $0xfc0] sm:$0xff] %v1066_v25  ;;  %1579 = vst [vmem:[#allocation7 + $0xfc8] sm:$0xff] %v1067_v26 }
 0x12d   :  { %1580 = vst [vmem:[#allocation7 + $0xfd0] sm:$0xff] %v1068_v30  ;;  %1581 = vst [vmem:[#allocation7 + $0xfd8] sm:$0xff] %v1069_v31 }
 0x12e   :  { %1582 = vst [vmem:[#allocation7 + $0xfe0] sm:$0xff] %v1070_v32  ;;  %1583 = vst [vmem:[#allocation7 + $0xfe8] sm:$0xff] %v1071_v36 }
 0x12f   :  { %1584 = vst [vmem:[#allocation7 + $0xff0] sm:$0xff] %v1072_v37  ;;  %1585 = vst [vmem:[#allocation7 + $0xff8] sm:$0xff] %v1073_v38 }
 0x130   :  { %1664 = shalt.err (!%p1661_p6)
}
 0x131   :  { %s1665_s10 = scalar_lea.hbm %s2261_s2, 65536 }
 0x132   :  { %p1666_p7 = scmp.ne.s32.totalorder %s2261_s2, %s1665_s10  ;;  %p1669_p8 = scmp.lt.u32.totalorder %s1665_s10, %s2261_s2 }
 0x134   :  { %p1671_p9 = pnand %p1669_p8, %p1666_p7 }
 0x136   :  { %1674 = shalt.err (!%p1671_p9)
}
 0x137   :  { %1597 = dma.vmem_to_hbm [thread:$0]  %s1592_s6, 65536, %s2261_s2, [#allocation4], %s1682_s19, %s1682_s19, %s1683_s20  }
 0x138   :  { %1679 = dma.done.wait [#allocation4], 65536  }
 0x139   :  { %1680 = vsyncadd [#allocation4], 4294901760 }
 0x13a   :  { %1601 = vsyncpa [#allocation3], 1 }
 0x13b   :  { %1602 = vsyncpa [#allocation6], 1 }
 0x13c   :  { %1603 = vsyncpa [#allocation4], 1 }

</bundles_post_ra>
